<compile_context>
chip_gen: v7x
topology: tpu7x:2x2x1
jax: 0.10.0
libtpu: 0.0.40
codegen_flags: <defaults>
</compile_context>

<pallas_src>
import functools

import jax
import jax.numpy as jnp
from jax.experimental import pallas as pl
from jax.experimental.pallas import tpu as pltpu


def _round_up(x, m):
    return ((x + m - 1) // m) * m


# -----------------------------------------------------------------------------
# Pallas kernels: fused matmul + bias + activation (optionally K-tiled)
# -----------------------------------------------------------------------------
def _epilogue(acc, act, sigmoid_cols, col_offset):
    if act == "relu":
        return jnp.maximum(acc, 0.0)
    if act == "sigmoid":
        return jax.nn.sigmoid(acc)
    if act == "sigmoid_head":
        # Fused detection heads: sigmoid on the first `sigmoid_cols` output
        # channels (heatmap), identity on the rest (offset / bbox / padding).
        col = jax.lax.broadcasted_iota(jnp.int32, acc.shape, 1) + col_offset
        return jnp.where(col < sigmoid_cols, jax.nn.sigmoid(acc), acc)
    return acc


def _mm_kernel(x_ref, w_ref, b_ref, o_ref, *, act, sigmoid_cols, tn):
    """Single K-step:  out = act(x @ w + b)   (bf16 operands, f32 accumulate)."""
    acc = jnp.dot(x_ref[...], w_ref[...], preferred_element_type=jnp.float32)
    acc = acc + b_ref[...]
    col_offset = pl.program_id(1) * tn
    o_ref[...] = _epilogue(acc, act, sigmoid_cols, col_offset).astype(o_ref.dtype)


def _mm_kernel_ktiled(x_ref, w_ref, b_ref, o_ref, acc_ref, *, act, sigmoid_cols, tn):
    """K-tiled variant with a VMEM f32 accumulator (reduction axis = grid axis 2)."""
    @pl.when(pl.program_id(2) == 0)
    def _():
        acc_ref[...] = jnp.zeros_like(acc_ref)

    acc_ref[...] += jnp.dot(x_ref[...], w_ref[...],
                            preferred_element_type=jnp.float32)

    @pl.when(pl.program_id(2) == pl.num_programs(2) - 1)
    def _():
        acc = acc_ref[...] + b_ref[...]
        col_offset = pl.program_id(1) * tn
        o_ref[...] = _epilogue(acc, act, sigmoid_cols, col_offset).astype(o_ref.dtype)


def pallas_matmul(x, w, b, act="none", *, sigmoid_cols=0,
                  tm=512, tn=128, tk=512, out_dtype=jnp.float32):
    """act(x @ w + b) with x:(M,K) w:(K,N) b:(N,) -> (M,N) in out_dtype.

    MXU operands are cast to bf16; bias / activation epilogue runs in f32.
    N is padded to a multiple of 128 (lane-dense stores) and sliced afterwards.
    """
    M, K = x.shape
    Kw, N = w.shape
    assert K == Kw

    # Tile selection (avoid M padding when a single tile already covers M).
    tm_eff = min(tm, _round_up(M, 8))
    Mp = _round_up(M, tm_eff)
    Np = _round_up(N, 128)
    tn_eff = min(tn, Np)                  # tn is a multiple of 128 -> divides Np
    if K <= tk:
        tk_eff, Kp = K, K                 # full-K block, no alignment constraint
    else:
        tk_eff = tk                       # multiple of 128
        Kp = _round_up(K, tk_eff)
    nk = Kp // tk_eff

    x_in = x.astype(jnp.bfloat16)
    if (Mp, Kp) != (M, K):
        x_in = jnp.pad(x_in, ((0, Mp - M), (0, Kp - K)))
    w_in = w.astype(jnp.bfloat16)
    if (Kp, Np) != (K, N):
        w_in = jnp.pad(w_in, ((0, Kp - K), (0, Np - N)))
    b_in = b.astype(jnp.float32).reshape(1, N)
    if Np != N:
        b_in = jnp.pad(b_in, ((0, 0), (0, Np - N)))

    # Raise the scoped VMEM limit only as far as the tiles need (keeps us well
    # under the 64 MiB physical VMEM of v7x while allowing big tiles on v6e).
    tile_bytes = (2 * tm_eff * tk_eff * 2 + 2 * tk_eff * tn_eff * 2
                  + 3 * tm_eff * tn_eff * 4 + 2 * tn_eff * 4)
    vmem_limit = min(max(32 * 1024 * 1024, 2 * tile_bytes), 60 * 1024 * 1024)

    if nk == 1:
        out = pl.pallas_call(
            functools.partial(_mm_kernel, act=act,
                              sigmoid_cols=sigmoid_cols, tn=tn_eff),
            out_shape=jax.ShapeDtypeStruct((Mp, Np), out_dtype),
            grid_spec=pltpu.PrefetchScalarGridSpec(
                num_scalar_prefetch=0,
                grid=(Mp // tm_eff, Np // tn_eff),
                in_specs=[
                    pl.BlockSpec((tm_eff, tk_eff), lambda i, j: (i, 0)),
                    pl.BlockSpec((tk_eff, tn_eff), lambda i, j: (0, j)),
                    pl.BlockSpec((1, tn_eff), lambda i, j: (0, j)),
                ],
                out_specs=pl.BlockSpec((tm_eff, tn_eff), lambda i, j: (i, j)),
            ),
            compiler_params=pltpu.CompilerParams(
                dimension_semantics=("parallel", "parallel"),
                vmem_limit_bytes=vmem_limit),
        )(x_in, w_in, b_in)
    else:
        out = pl.pallas_call(
            functools.partial(_mm_kernel_ktiled, act=act,
                              sigmoid_cols=sigmoid_cols, tn=tn_eff),
            out_shape=jax.ShapeDtypeStruct((Mp, Np), out_dtype),
            grid_spec=pltpu.PrefetchScalarGridSpec(
                num_scalar_prefetch=0,
                grid=(Mp // tm_eff, Np // tn_eff, nk),
                in_specs=[
                    pl.BlockSpec((tm_eff, tk_eff), lambda i, j, k: (i, k)),
                    pl.BlockSpec((tk_eff, tn_eff), lambda i, j, k: (k, j)),
                    pl.BlockSpec((1, tn_eff), lambda i, j, k: (0, j)),
                ],
                out_specs=pl.BlockSpec((tm_eff, tn_eff), lambda i, j, k: (i, j)),
                scratch_shapes=[pltpu.VMEM((tm_eff, tn_eff), jnp.float32)],
            ),
            compiler_params=pltpu.CompilerParams(
                dimension_semantics=("parallel", "parallel", "arbitrary"),
                vmem_limit_bytes=vmem_limit),
        )(x_in, w_in, b_in)

    if (Mp, Np) != (M, N):
        out = out[:M, :N]
    return out


# -----------------------------------------------------------------------------
# Conv helpers (glue: im2col / reshapes; compute stays in the Pallas matmul)
# -----------------------------------------------------------------------------
def im2col(x, ksize, stride, pad):
    """x:(N,H,W,C) -> (N,Ho,Wo,ksize*ksize*C), patch order (kh,kw,Cin)."""
    # TODO(synk): at real EfficientNet resolutions, replace this materialized
    # im2col (ksize^2 HBM blowup) with an in-kernel patch-accumulation grid axis.
    N, H, W, C = x.shape
    xp = jnp.pad(x, ((0, 0), (pad, pad), (pad, pad), (0, 0)))
    Ho = (H + 2 * pad - ksize) // stride + 1
    Wo = (W + 2 * pad - ksize) // stride + 1
    cols = []
    for i in range(ksize):
        for j in range(ksize):
            cols.append(xp[:, i:i + stride * Ho:stride,
                           j:j + stride * Wo:stride, :])
    return jnp.concatenate(cols, axis=-1), Ho, Wo


def conv2d(x, w, b, ksize, stride, pad, act="none", sigmoid_cols=0,
           out_dtype=jnp.float32):
    """x:(N,H,W,Cin), w:(ksize*ksize*Cin, Cout), b:(Cout,) -> (N,Ho,Wo,Cout)."""
    N = x.shape[0]
    if ksize == 1 and stride == 1 and pad == 0:
        patches, Ho, Wo = x, x.shape[1], x.shape[2]
    else:
        # patches materialized in bf16 (half the HBM bytes of the old f32 path)
        patches, Ho, Wo = im2col(x.astype(jnp.bfloat16), ksize, stride, pad)
    K = patches.shape[-1]
    y = pallas_matmul(patches.reshape(N * Ho * Wo, K), w, b, act=act,
                      sigmoid_cols=sigmoid_cols, out_dtype=out_dtype)
    return y.reshape(N, Ho, Wo, w.shape[1])


def conv_transpose2d_k2s2(x, w, b_c, act="none", out_dtype=jnp.float32):
    """ConvTranspose2d(kernel=2, stride=2).

    w:(Cin, 4*Cout), columns ordered (dh, dw, Cout).  b_c:(Cout,) is the
    PyTorch per-output-channel bias; it is tiled consistently over (dh, dw).
    """
    N, H, W, Cin = x.shape
    Cout = w.shape[1] // 4
    b = jnp.tile(b_c, 4)
    y = pallas_matmul(x.reshape(N * H * W, Cin), w, b, act=act,
                      out_dtype=out_dtype)
    y = y.reshape(N, H, W, 2, 2, Cout)
    # TODO(synk): fold this pixel-shuffle into the matmul's out_specs index_map
    # at real resolutions to save one HBM pass over the decoder tensor.
    y = jnp.transpose(y, (0, 1, 3, 2, 4, 5)).reshape(N, 2 * H, 2 * W, Cout)
    return y


# -----------------------------------------------------------------------------
# Deterministic parameter construction
# -----------------------------------------------------------------------------
def make_params(key):
    def nrm(k, shape, scale=0.05):
        return scale * jax.random.normal(k, shape, dtype=jnp.float32)

    ks = jax.random.split(key, 20)
    p = {}
    # Encoder (EfficientNet stand-in): two 3x3 stride-2 convs + ReLU
    p["enc1_w"] = nrm(ks[0], (3 * 3 * 4, 16));  p["enc1_b"] = jnp.zeros((16,))
    p["enc2_w"] = nrm(ks[1], (3 * 3 * 16, 32)); p["enc2_b"] = jnp.zeros((32,))
    # Decoder: ConvTranspose2d k=2 s=2, 32 -> 16, ReLU.  Bias is per-channel (16,)
    p["dec_w"] = nrm(ks[2], (32, 4 * 16));      p["dec_b"] = jnp.zeros((16,))
    # Heads: 3x3 conv (16->16, ReLU) then 1x1 conv
    p["hm1_w"] = nrm(ks[3], (3 * 3 * 16, 16));  p["hm1_b"] = jnp.zeros((16,))
    p["hm2_w"] = nrm(ks[4], (16, 3));           p["hm2_b"] = jnp.zeros((3,))
    p["off1_w"] = nrm(ks[5], (3 * 3 * 16, 16)); p["off1_b"] = jnp.zeros((16,))
    p["off2_w"] = nrm(ks[6], (16, 2));          p["off2_b"] = jnp.zeros((2,))
    p["bb1_w"] = nrm(ks[7], (3 * 3 * 16, 16));  p["bb1_b"] = jnp.zeros((16,))
    p["bb2_w"] = nrm(ks[8], (16, 2));           p["bb2_b"] = jnp.zeros((2,))
    # RoI model: 3x3 conv (3->8, ReLU), GAP, linear 8->16
    p["roi_w"] = nrm(ks[9], (3 * 3 * 3, 8));    p["roi_b"] = jnp.zeros((8,))
    p["roi_fc_w"] = nrm(ks[10], (8, 16));       p["roi_fc_b"] = jnp.zeros((16,))
    # Placeholder CLIP projection (deterministic)
    p["clip_w"] = nrm(ks[11], (7, 512))
    return p


# -----------------------------------------------------------------------------
# Post-processing glue (torch.no_grad() section in the reference)
# -----------------------------------------------------------------------------
def get_bounding_box_prediction(heatmap, offset, bbox, image_id):
    """Simplified top-1 CenterNet-style decode (plain JAX glue)."""
    N, H, W, C = heatmap.shape
    flat = heatmap.reshape(N, -1)
    idx = jnp.argmax(flat, axis=1)
    score = jnp.max(flat, axis=1)
    cls = idx % C
    sp = idx // C
    y = (sp // W).astype(jnp.float32)
    x = (sp % W).astype(jnp.float32)
    off = offset.reshape(N, H * W, 2)[jnp.arange(N), sp]
    wh = bbox.reshape(N, H * W, 2)[jnp.arange(N), sp]
    cx = x + off[:, 0]
    cy = y + off[:, 1]
    dets = jnp.stack(
        [image_id.astype(jnp.float32),
         cx - wh[:, 0] / 2, cy - wh[:, 1] / 2,
         cx + wh[:, 0] / 2, cy + wh[:, 1] / 2,
         score, cls.astype(jnp.float32)], axis=1)
    return dets


def clip_model(params, detections):
    # TODO(synk): real CLIPModel reads image files + a pretrained CLIP
    # checkpoint; here we emit a deterministic L2-normalized projection.
    enc = detections @ params["clip_w"]
    return enc / (jnp.linalg.norm(enc, axis=-1, keepdims=True) + 1e-6)


def mask_model(detections, H, W):
    # TODO(synk): real MaskModel rasterizes per-detection masks; simplified to
    # an all-ones spatial mask of the decoder resolution.
    N = detections.shape[0]
    return jnp.ones((N, H, W, 1), dtype=jnp.float32)


# -----------------------------------------------------------------------------
# Full model forward
# -----------------------------------------------------------------------------
def efficientnet_convt_forward(params, image, image_id):
    # ---- encoder (EfficientNet stand-in) ----
    x = conv2d(image, params["enc1_w"], params["enc1_b"], 3, 2, 1,
               act="relu", out_dtype=jnp.bfloat16)
    x = conv2d(x, params["enc2_w"], params["enc2_b"], 3, 2, 1,
               act="relu", out_dtype=jnp.bfloat16)

    # ---- decoder (ConvTranspose2d k=2 s=2 + ReLU) ----
    x = conv_transpose2d_k2s2(x, params["dec_w"], params["dec_b"],
                              act="relu", out_dtype=jnp.bfloat16)

    # ---- heads: the three 3x3 convs fused into ONE matmul (Cout = 48) ----
    w3 = jnp.concatenate([params["hm1_w"], params["off1_w"], params["bb1_w"]],
                         axis=1)
    b3 = jnp.concatenate([params["hm1_b"], params["off1_b"], params["bb1_b"]])
    h3 = conv2d(x, w3, b3, 3, 1, 1, act="relu", out_dtype=jnp.bfloat16)

    # ---- the three 1x1 head projections fused into ONE block-diag matmul ----
    w1 = jnp.zeros((48, 7), jnp.float32)
    w1 = w1.at[0:16, 0:3].set(params["hm2_w"])
    w1 = w1.at[16:32, 3:5].set(params["off2_w"])
    w1 = w1.at[32:48, 5:7].set(params["bb2_w"])
    b1 = jnp.concatenate([params["hm2_b"], params["off2_b"], params["bb2_b"]])
    heads = conv2d(h3, w1, b1, 1, 1, 0, act="sigmoid_head", sigmoid_cols=3)
    output_heatmap = heads[..., 0:3]      # sigmoid applied in-kernel
    output_offset = heads[..., 3:5]
    output_bbox = heads[..., 5:7]

    # ---- no-grad post-processing ----
    detections = jax.lax.stop_gradient(
        get_bounding_box_prediction(output_heatmap, output_offset,
                                    output_bbox, image_id))
    output_clip_encoding = jax.lax.stop_gradient(clip_model(params, detections))
    output_mask = jax.lax.stop_gradient(
        mask_model(detections, output_heatmap.shape[1],
                   output_heatmap.shape[2]))

    # ---- masked heatmaps: tiny elementwise op -> plain jnp (no kernel) ----
    masked_heatmaps_features = output_heatmap * output_mask

    # ---- RoI model: Pallas conv, then cheap GAP + tiny FC in plain jnp ----
    r = conv2d(masked_heatmaps_features, params["roi_w"], params["roi_b"],
               3, 1, 1, act="relu")
    r = jnp.mean(r, axis=(1, 2))                           # global average pool
    model_encodings = r @ params["roi_fc_w"] + params["roi_fc_b"]

    return (output_heatmap, output_bbox, output_offset, detections,
            output_clip_encoding, model_encodings)


# -----------------------------------------------------------------------------
if __name__ == "__main__":
    key = jax.random.PRNGKey(0)
    pkey, ikey = jax.random.split(key)
    params = make_params(pkey)

    N, H, W, C = 2, 16, 16, 4
    batch = {
        "image": jax.random.normal(ikey, (N, H, W, C), dtype=jnp.float32),
        "image_id": jnp.arange(N, dtype=jnp.int32),
        "image_path": ["img_0.jpg", "img_1.jpg"],   # unused placeholder
        "flattened_index": jnp.arange(N),           # unused placeholder
    }

    fwd = jax.jit(efficientnet_convt_forward)
    outs = fwd(params, batch["image"], batch["image_id"])
    outs = jax.block_until_ready(outs)

    hm, bb, off, dets, clip_enc, enc = outs
    assert hm.shape == (N, 8, 8, 3)
    assert bb.shape == (N, 8, 8, 2)
    assert off.shape == (N, 8, 8, 2)
    assert dets.shape == (N, 7)
    assert clip_enc.shape == (N, 512)
    assert enc.shape == (N, 16)
    assert bool(jnp.all(jnp.isfinite(hm))) and bool(jnp.all(jnp.isfinite(enc)))
    print("KERNEL_OK")
</pallas_src>

<mosaic_0001>
module attributes {stable_mosaic.version = 11 : i64} {
  func.func @_mm_kernel(%arg0: i32, %arg1: i32, %arg2: memref<128x36xbf16, #tpu.memory_space<vmem>>, %arg3: memref<36x128xbf16, #tpu.memory_space<vmem>>, %arg4: memref<1x128xf32, #tpu.memory_space<vmem>>, %arg5: memref<128x128xbf16, #tpu.memory_space<vmem>>) attributes {dimension_semantics = [#tpu.dimension_semantics<parallel>, #tpu.dimension_semantics<parallel>], iteration_bounds = array<i64: 1, 1>, scalar_prefetch = 0 : i64, scratch_operands = 0 : i64, tpu.core_type = #tpu.core_type<tc>, window_params = [{transform_indices = @transform_0, window_bounds = array<i64: 128, 36>}, {transform_indices = @transform_1, window_bounds = array<i64: 36, 128>}, {transform_indices = @transform_2, window_bounds = array<i64: 1, 128>}, {transform_indices = @transform_3, window_bounds = array<i64: 128, 128>}]} {
    %c0 = arith.constant 0 : index
    %c0_0 = arith.constant 0 : index
    %0 = vector.load %arg2[%c0, %c0_0] : memref<128x36xbf16, #tpu.memory_space<vmem>>, vector<128x36xbf16>
    %c0_1 = arith.constant 0 : index
    %c0_2 = arith.constant 0 : index
    %1 = vector.load %arg3[%c0_1, %c0_2] : memref<36x128xbf16, #tpu.memory_space<vmem>>, vector<36x128xbf16>
    %cst = arith.constant dense<0.000000e+00> : vector<128x128xf32>
    %2 = tpu.matmul %0, %1, %cst {dimension_numbers = #tpu.dot_dimension_numbers<[1], [0], [0], [1], [0, 0, 1, 1], [], []>} : vector<128x36xbf16>, vector<36x128xbf16>, vector<128x128xf32> -> vector<128x128xf32>
    %c0_3 = arith.constant 0 : index
    %c0_4 = arith.constant 0 : index
    %3 = vector.load %arg4[%c0_3, %c0_4] : memref<1x128xf32, #tpu.memory_space<vmem>>, vector<1x128xf32>
    %4 = vector.broadcast %3 : vector<1x128xf32> to vector<128x128xf32>
    %5 = arith.addf %2, %4 : vector<128x128xf32>
    %cst_5 = arith.constant 0.000000e+00 : f32
    %6 = vector.broadcast %cst_5 : f32 to vector<128x128xf32>
    %7 = arith.maximumf %5, %6 : vector<128x128xf32>
    %8 = arith.truncf %7 : vector<128x128xf32> to vector<128x128xbf16>
    %c0_6 = arith.constant 0 : index
    %c0_7 = arith.constant 0 : index
    %9 = vector.load %arg5[%c0_6, %c0_7] : memref<128x128xbf16, #tpu.memory_space<vmem>>, vector<128x128xbf16>
    tpu.vector_store %arg5[%c0_6, %c0_7], %8 {strides = array<i32>} : memref<128x128xbf16, #tpu.memory_space<vmem>>, vector<128x128xbf16>,
    return
  }
  func.func @transform_0(%arg0: i32, %arg1: i32) -> (i32, i32) {
    %c0_i32 = arith.constant 0 : i32
    %c0_i32_0 = arith.constant 0 : i32
    return %arg0, %c0_i32 : i32, i32
  }
  func.func @transform_1(%arg0: i32, %arg1: i32) -> (i32, i32) {
    %c0_i32 = arith.constant 0 : i32
    %c0_i32_0 = arith.constant 0 : i32
    return %c0_i32, %arg1 : i32, i32
  }
  func.func @transform_2(%arg0: i32, %arg1: i32) -> (i32, i32) {
    %c0_i32 = arith.constant 0 : i32
    %c0_i32_0 = arith.constant 0 : i32
    return %c0_i32, %arg1 : i32, i32
  }
  func.func @transform_3(%arg0: i32, %arg1: i32) -> (i32, i32) {
    %c0_i32 = arith.constant 0 : i32
    return %arg0, %arg1 : i32, i32
  }
}

module attributes {stable_mosaic.version = 11 : i64} {
  func.func @_mm_kernel(%arg0: i32, %arg1: i32, %arg2: memref<32x32xbf16, #tpu.memory_space<vmem>>, %arg3: memref<32x128xbf16, #tpu.memory_space<vmem>>, %arg4: memref<1x128xf32, #tpu.memory_space<vmem>>, %arg5: memref<32x128xbf16, #tpu.memory_space<vmem>>) attributes {dimension_semantics = [#tpu.dimension_semantics<parallel>, #tpu.dimension_semantics<parallel>], iteration_bounds = array<i64: 1, 1>, scalar_prefetch = 0 : i64, scratch_operands = 0 : i64, tpu.core_type = #tpu.core_type<tc>, window_params = [{transform_indices = @transform_0, window_bounds = array<i64: 32, 32>}, {transform_indices = @transform_1, window_bounds = array<i64: 32, 128>}, {transform_indices = @transform_2, window_bounds = array<i64: 1, 128>}, {transform_indices = @transform_3, window_bounds = array<i64: 32, 128>}]} {
    %c0 = arith.constant 0 : index
    %c0_0 = arith.constant 0 : index
    %0 = vector.load %arg2[%c0, %c0_0] : memref<32x32xbf16, #tpu.memory_space<vmem>>, vector<32x32xbf16>
    %c0_1 = arith.constant 0 : index
    %c0_2 = arith.constant 0 : index
    %1 = vector.load %arg3[%c0_1, %c0_2] : memref<32x128xbf16, #tpu.memory_space<vmem>>, vector<32x128xbf16>
    %cst = arith.constant dense<0.000000e+00> : vector<32x128xf32>
    %2 = tpu.matmul %0, %1, %cst {dimension_numbers = #tpu.dot_dimension_numbers<[1], [0], [0], [1], [0, 0, 1, 1], [], []>} : vector<32x32xbf16>, vector<32x128xbf16>, vector<32x128xf32> -> vector<32x128xf32>
    %c0_3 = arith.constant 0 : index
    %c0_4 = arith.constant 0 : index
    %3 = vector.load %arg4[%c0_3, %c0_4] : memref<1x128xf32, #tpu.memory_space<vmem>>, vector<1x128xf32>
    %4 = vector.broadcast %3 : vector<1x128xf32> to vector<32x128xf32>
    %5 = arith.addf %2, %4 : vector<32x128xf32>
    %cst_5 = arith.constant 0.000000e+00 : f32
    %6 = vector.broadcast %cst_5 : f32 to vector<32x128xf32>
    %7 = arith.maximumf %5, %6 : vector<32x128xf32>
    %8 = arith.truncf %7 : vector<32x128xf32> to vector<32x128xbf16>
    %c0_6 = arith.constant 0 : index
    %c0_7 = arith.constant 0 : index
    %9 = vector.load %arg5[%c0_6, %c0_7] : memref<32x128xbf16, #tpu.memory_space<vmem>>, vector<32x128xbf16>
    tpu.vector_store %arg5[%c0_6, %c0_7], %8 {strides = array<i32>} : memref<32x128xbf16, #tpu.memory_space<vmem>>, vector<32x128xbf16>,
    return
  }
  func.func @transform_0(%arg0: i32, %arg1: i32) -> (i32, i32) {
    %c0_i32 = arith.constant 0 : i32
    %c0_i32_0 = arith.constant 0 : i32
    return %arg0, %c0_i32 : i32, i32
  }
  func.func @transform_1(%arg0: i32, %arg1: i32) -> (i32, i32) {
    %c0_i32 = arith.constant 0 : i32
    %c0_i32_0 = arith.constant 0 : i32
    return %c0_i32, %arg1 : i32, i32
  }
  func.func @transform_2(%arg0: i32, %arg1: i32) -> (i32, i32) {
    %c0_i32 = arith.constant 0 : i32
    %c0_i32_0 = arith.constant 0 : i32
    return %c0_i32, %arg1 : i32, i32
  }
  func.func @transform_3(%arg0: i32, %arg1: i32) -> (i32, i32) {
    %c0_i32 = arith.constant 0 : i32
    return %arg0, %arg1 : i32, i32
  }
}

module attributes {stable_mosaic.version = 11 : i64} {
  func.func @_mm_kernel(%arg0: i32, %arg1: i32, %arg2: memref<32x144xbf16, #tpu.memory_space<vmem>>, %arg3: memref<144x128xbf16, #tpu.memory_space<vmem>>, %arg4: memref<1x128xf32, #tpu.memory_space<vmem>>, %arg5: memref<32x128xbf16, #tpu.memory_space<vmem>>) attributes {dimension_semantics = [#tpu.dimension_semantics<parallel>, #tpu.dimension_semantics<parallel>], iteration_bounds = array<i64: 1, 1>, scalar_prefetch = 0 : i64, scratch_operands = 0 : i64, tpu.core_type = #tpu.core_type<tc>, window_params = [{transform_indices = @transform_0, window_bounds = array<i64: 32, 144>}, {transform_indices = @transform_1, window_bounds = array<i64: 144, 128>}, {transform_indices = @transform_2, window_bounds = array<i64: 1, 128>}, {transform_indices = @transform_3, window_bounds = array<i64: 32, 128>}]} {
    %c0 = arith.constant 0 : index
    %c0_0 = arith.constant 0 : index
    %0 = vector.load %arg2[%c0, %c0_0] : memref<32x144xbf16, #tpu.memory_space<vmem>>, vector<32x144xbf16>
    %c0_1 = arith.constant 0 : index
    %c0_2 = arith.constant 0 : index
    %1 = vector.load %arg3[%c0_1, %c0_2] : memref<144x128xbf16, #tpu.memory_space<vmem>>, vector<144x128xbf16>
    %cst = arith.constant dense<0.000000e+00> : vector<32x128xf32>
    %2 = tpu.matmul %0, %1, %cst {dimension_numbers = #tpu.dot_dimension_numbers<[1], [0], [0], [1], [0, 0, 1, 1], [], []>} : vector<32x144xbf16>, vector<144x128xbf16>, vector<32x128xf32> -> vector<32x128xf32>
    %c0_3 = arith.constant 0 : index
    %c0_4 = arith.constant 0 : index
    %3 = vector.load %arg4[%c0_3, %c0_4] : memref<1x128xf32, #tpu.memory_space<vmem>>, vector<1x128xf32>
    %4 = vector.broadcast %3 : vector<1x128xf32> to vector<32x128xf32>
    %5 = arith.addf %2, %4 : vector<32x128xf32>
    %cst_5 = arith.constant 0.000000e+00 : f32
    %6 = vector.broadcast %cst_5 : f32 to vector<32x128xf32>
    %7 = arith.maximumf %5, %6 : vector<32x128xf32>
    %8 = arith.truncf %7 : vector<32x128xf32> to vector<32x128xbf16>
    %c0_6 = arith.constant 0 : index
    %c0_7 = arith.constant 0 : index
    %9 = vector.load %arg5[%c0_6, %c0_7] : memref<32x128xbf16, #tpu.memory_space<vmem>>, vector<32x128xbf16>
    tpu.vector_store %arg5[%c0_6, %c0_7], %8 {strides = array<i32>} : memref<32x128xbf16, #tpu.memory_space<vmem>>, vector<32x128xbf16>,
    return
  }
  func.func @transform_0(%arg0: i32, %arg1: i32) -> (i32, i32) {
    %c0_i32 = arith.constant 0 : i32
    %c0_i32_0 = arith.constant 0 : i32
    return %arg0, %c0_i32 : i32, i32
  }
  func.func @transform_1(%arg0: i32, %arg1: i32) -> (i32, i32) {
    %c0_i32 = arith.constant 0 : i32
    %c0_i32_0 = arith.constant 0 : i32
    return %c0_i32, %arg1 : i32, i32
  }
  func.func @transform_2(%arg0: i32, %arg1: i32) -> (i32, i32) {
    %c0_i32 = arith.constant 0 : i32
    %c0_i32_0 = arith.constant 0 : i32
    return %c0_i32, %arg1 : i32, i32
  }
  func.func @transform_3(%arg0: i32, %arg1: i32) -> (i32, i32) {
    %c0_i32 = arith.constant 0 : i32
    return %arg0, %arg1 : i32, i32
  }
}

module attributes {stable_mosaic.version = 11 : i64} {
  func.func @_mm_kernel(%arg0: i32, %arg1: i32, %arg2: memref<128x144xbf16, #tpu.memory_space<vmem>>, %arg3: memref<144x128xbf16, #tpu.memory_space<vmem>>, %arg4: memref<1x128xf32, #tpu.memory_space<vmem>>, %arg5: memref<128x128xbf16, #tpu.memory_space<vmem>>) attributes {dimension_semantics = [#tpu.dimension_semantics<parallel>, #tpu.dimension_semantics<parallel>], iteration_bounds = array<i64: 1, 1>, scalar_prefetch = 0 : i64, scratch_operands = 0 : i64, tpu.core_type = #tpu.core_type<tc>, window_params = [{transform_indices = @transform_0, window_bounds = array<i64: 128, 144>}, {transform_indices = @transform_1, window_bounds = array<i64: 144, 128>}, {transform_indices = @transform_2, window_bounds = array<i64: 1, 128>}, {transform_indices = @transform_3, window_bounds = array<i64: 128, 128>}]} {
    %c0 = arith.constant 0 : index
    %c0_0 = arith.constant 0 : index
    %0 = vector.load %arg2[%c0, %c0_0] : memref<128x144xbf16, #tpu.memory_space<vmem>>, vector<128x144xbf16>
    %c0_1 = arith.constant 0 : index
    %c0_2 = arith.constant 0 : index
    %1 = vector.load %arg3[%c0_1, %c0_2] : memref<144x128xbf16, #tpu.memory_space<vmem>>, vector<144x128xbf16>
    %cst = arith.constant dense<0.000000e+00> : vector<128x128xf32>
    %2 = tpu.matmul %0, %1, %cst {dimension_numbers = #tpu.dot_dimension_numbers<[1], [0], [0], [1], [0, 0, 1, 1], [], []>} : vector<128x144xbf16>, vector<144x128xbf16>, vector<128x128xf32> -> vector<128x128xf32>
    %c0_3 = arith.constant 0 : index
    %c0_4 = arith.constant 0 : index
    %3 = vector.load %arg4[%c0_3, %c0_4] : memref<1x128xf32, #tpu.memory_space<vmem>>, vector<1x128xf32>
    %4 = vector.broadcast %3 : vector<1x128xf32> to vector<128x128xf32>
    %5 = arith.addf %2, %4 : vector<128x128xf32>
    %cst_5 = arith.constant 0.000000e+00 : f32
    %6 = vector.broadcast %cst_5 : f32 to vector<128x128xf32>
    %7 = arith.maximumf %5, %6 : vector<128x128xf32>
    %8 = arith.truncf %7 : vector<128x128xf32> to vector<128x128xbf16>
    %c0_6 = arith.constant 0 : index
    %c0_7 = arith.constant 0 : index
    %9 = vector.load %arg5[%c0_6, %c0_7] : memref<128x128xbf16, #tpu.memory_space<vmem>>, vector<128x128xbf16>
    tpu.vector_store %arg5[%c0_6, %c0_7], %8 {strides = array<i32>} : memref<128x128xbf16, #tpu.memory_space<vmem>>, vector<128x128xbf16>,
    return
  }
  func.func @transform_0(%arg0: i32, %arg1: i32) -> (i32, i32) {
    %c0_i32 = arith.constant 0 : i32
    %c0_i32_0 = arith.constant 0 : i32
    return %arg0, %c0_i32 : i32, i32
  }
  func.func @transform_1(%arg0: i32, %arg1: i32) -> (i32, i32) {
    %c0_i32 = arith.constant 0 : i32
    %c0_i32_0 = arith.constant 0 : i32
    return %c0_i32, %arg1 : i32, i32
  }
  func.func @transform_2(%arg0: i32, %arg1: i32) -> (i32, i32) {
    %c0_i32 = arith.constant 0 : i32
    %c0_i32_0 = arith.constant 0 : i32
    return %c0_i32, %arg1 : i32, i32
  }
  func.func @transform_3(%arg0: i32, %arg1: i32) -> (i32, i32) {
    %c0_i32 = arith.constant 0 : i32
    return %arg0, %arg1 : i32, i32
  }
}

module attributes {stable_mosaic.version = 11 : i64} {
  func.func @_mm_kernel(%arg0: i32, %arg1: i32, %arg2: memref<128x48xbf16, #tpu.memory_space<vmem>>, %arg3: memref<48x128xbf16, #tpu.memory_space<vmem>>, %arg4: memref<1x128xf32, #tpu.memory_space<vmem>>, %arg5: memref<128x128xf32, #tpu.memory_space<vmem>>) attributes {dimension_semantics = [#tpu.dimension_semantics<parallel>, #tpu.dimension_semantics<parallel>], iteration_bounds = array<i64: 1, 1>, scalar_prefetch = 0 : i64, scratch_operands = 0 : i64, tpu.core_type = #tpu.core_type<tc>, window_params = [{transform_indices = @transform_0, window_bounds = array<i64: 128, 48>}, {transform_indices = @transform_1, window_bounds = array<i64: 48, 128>}, {transform_indices = @transform_2, window_bounds = array<i64: 1, 128>}, {transform_indices = @transform_3, window_bounds = array<i64: 128, 128>}]} {
    %c0 = arith.constant 0 : index
    %c0_0 = arith.constant 0 : index
    %0 = vector.load %arg2[%c0, %c0_0] : memref<128x48xbf16, #tpu.memory_space<vmem>>, vector<128x48xbf16>
    %c0_1 = arith.constant 0 : index
    %c0_2 = arith.constant 0 : index
    %1 = vector.load %arg3[%c0_1, %c0_2] : memref<48x128xbf16, #tpu.memory_space<vmem>>, vector<48x128xbf16>
    %cst = arith.constant dense<0.000000e+00> : vector<128x128xf32>
    %2 = tpu.matmul %0, %1, %cst {dimension_numbers = #tpu.dot_dimension_numbers<[1], [0], [0], [1], [0, 0, 1, 1], [], []>} : vector<128x48xbf16>, vector<48x128xbf16>, vector<128x128xf32> -> vector<128x128xf32>
    %c0_3 = arith.constant 0 : index
    %c0_4 = arith.constant 0 : index
    %3 = vector.load %arg4[%c0_3, %c0_4] : memref<1x128xf32, #tpu.memory_space<vmem>>, vector<1x128xf32>
    %4 = vector.broadcast %3 : vector<1x128xf32> to vector<128x128xf32>
    %5 = arith.addf %2, %4 : vector<128x128xf32>
    %c128_i32 = arith.constant 128 : i32
    %6 = arith.muli %arg1, %c128_i32 : i32
    %7 = tpu.iota {dimensions = array<i32: 1>} : vector<128x128xi32>
    %8 = vector.broadcast %6 : i32 to vector<128x128xi32>
    %9 = arith.addi %7, %8 : vector<128x128xi32>
    %c3_i32 = arith.constant 3 : i32
    %10 = vector.broadcast %c3_i32 : i32 to vector<128x128xi32>
    %11 = arith.cmpi slt, %9, %10 : vector<128x128xi32>
    %12 = arith.negf %5 : vector<128x128xf32>
    %13 = math.exp %12 : vector<128x128xf32>
    %cst_5 = arith.constant 1.000000e+00 : f32
    %14 = vector.broadcast %cst_5 : f32 to vector<128x128xf32>
    %15 = arith.addf %14, %13 : vector<128x128xf32>
    %16 = arith.divf %14, %15 : vector<128x128xf32>
    %17 = arith.select %11, %16, %5 : vector<128x128xi1>, vector<128x128xf32>
    %c0_6 = arith.constant 0 : index
    %c0_7 = arith.constant 0 : index
    %18 = vector.load %arg5[%c0_6, %c0_7] : memref<128x128xf32, #tpu.memory_space<vmem>>, vector<128x128xf32>
    tpu.vector_store %arg5[%c0_6, %c0_7], %17 {strides = array<i32>} : memref<128x128xf32, #tpu.memory_space<vmem>>, vector<128x128xf32>,
    return
  }
  func.func @transform_0(%arg0: i32, %arg1: i32) -> (i32, i32) {
    %c0_i32 = arith.constant 0 : i32
    %c0_i32_0 = arith.constant 0 : i32
    return %arg0, %c0_i32 : i32, i32
  }
  func.func @transform_1(%arg0: i32, %arg1: i32) -> (i32, i32) {
    %c0_i32 = arith.constant 0 : i32
    %c0_i32_0 = arith.constant 0 : i32
    return %c0_i32, %arg1 : i32, i32
  }
  func.func @transform_2(%arg0: i32, %arg1: i32) -> (i32, i32) {
    %c0_i32 = arith.constant 0 : i32
    %c0_i32_0 = arith.constant 0 : i32
    return %c0_i32, %arg1 : i32, i32
  }
  func.func @transform_3(%arg0: i32, %arg1: i32) -> (i32, i32) {
    %c0_i32 = arith.constant 0 : i32
    return %arg0, %arg1 : i32, i32
  }
}

module attributes {stable_mosaic.version = 11 : i64} {
  func.func @_mm_kernel(%arg0: i32, %arg1: i32, %arg2: memref<128x27xbf16, #tpu.memory_space<vmem>>, %arg3: memref<27x128xbf16, #tpu.memory_space<vmem>>, %arg4: memref<1x128xf32, #tpu.memory_space<vmem>>, %arg5: memref<128x128xf32, #tpu.memory_space<vmem>>) attributes {dimension_semantics = [#tpu.dimension_semantics<parallel>, #tpu.dimension_semantics<parallel>], iteration_bounds = array<i64: 1, 1>, scalar_prefetch = 0 : i64, scratch_operands = 0 : i64, tpu.core_type = #tpu.core_type<tc>, window_params = [{transform_indices = @transform_0, window_bounds = array<i64: 128, 27>}, {transform_indices = @transform_1, window_bounds = array<i64: 27, 128>}, {transform_indices = @transform_2, window_bounds = array<i64: 1, 128>}, {transform_indices = @transform_3, window_bounds = array<i64: 128, 128>}]} {
    %c0 = arith.constant 0 : index
    %c0_0 = arith.constant 0 : index
    %0 = vector.load %arg2[%c0, %c0_0] : memref<128x27xbf16, #tpu.memory_space<vmem>>, vector<128x27xbf16>
    %c0_1 = arith.constant 0 : index
    %c0_2 = arith.constant 0 : index
    %1 = vector.load %arg3[%c0_1, %c0_2] : memref<27x128xbf16, #tpu.memory_space<vmem>>, vector<27x128xbf16>
    %cst = arith.constant dense<0.000000e+00> : vector<128x128xf32>
    %2 = tpu.matmul %0, %1, %cst {dimension_numbers = #tpu.dot_dimension_numbers<[1], [0], [0], [1], [0, 0, 1, 1], [], []>} : vector<128x27xbf16>, vector<27x128xbf16>, vector<128x128xf32> -> vector<128x128xf32>
    %c0_3 = arith.constant 0 : index
    %c0_4 = arith.constant 0 : index
    %3 = vector.load %arg4[%c0_3, %c0_4] : memref<1x128xf32, #tpu.memory_space<vmem>>, vector<1x128xf32>
    %4 = vector.broadcast %3 : vector<1x128xf32> to vector<128x128xf32>
    %5 = arith.addf %2, %4 : vector<128x128xf32>
    %cst_5 = arith.constant 0.000000e+00 : f32
    %6 = vector.broadcast %cst_5 : f32 to vector<128x128xf32>
    %7 = arith.maximumf %5, %6 : vector<128x128xf32>
    %c0_6 = arith.constant 0 : index
    %c0_7 = arith.constant 0 : index
    %8 = vector.load %arg5[%c0_6, %c0_7] : memref<128x128xf32, #tpu.memory_space<vmem>>, vector<128x128xf32>
    tpu.vector_store %arg5[%c0_6, %c0_7], %7 {strides = array<i32>} : memref<128x128xf32, #tpu.memory_space<vmem>>, vector<128x128xf32>,
    return
  }
  func.func @transform_0(%arg0: i32, %arg1: i32) -> (i32, i32) {
    %c0_i32 = arith.constant 0 : i32
    %c0_i32_0 = arith.constant 0 : i32
    return %arg0, %c0_i32 : i32, i32
  }
  func.func @transform_1(%arg0: i32, %arg1: i32) -> (i32, i32) {
    %c0_i32 = arith.constant 0 : i32
    %c0_i32_0 = arith.constant 0 : i32
    return %c0_i32, %arg1 : i32, i32
  }
  func.func @transform_2(%arg0: i32, %arg1: i32) -> (i32, i32) {
    %c0_i32 = arith.constant 0 : i32
    %c0_i32_0 = arith.constant 0 : i32
    return %c0_i32, %arg1 : i32, i32
  }
  func.func @transform_3(%arg0: i32, %arg1: i32) -> (i32, i32) {
    %c0_i32 = arith.constant 0 : i32
    return %arg0, %arg1 : i32, i32
  }
}

</mosaic_0001>

<bundles_post_ra>
// kernel: efficientnet_convt_forward.6
= control target key start
LH: loop header
LB: loop body
LE: loop exit
PB: predicated region body
PF: predicated region fallthrough
CT: control target
= control target key end

     0   :  { %vm98_vm0 = vcmask 293888   ;;  %vm123_vm1 = vcmask 1041408   ;;  %s563_s1 = inlined_call_operand.vmem [shape: bf16[36,128], index: 1, kind: input, shape index: {}]   ;;  %s564_s0 = inlined_call_operand.vmem [shape: bf16[128,36], index: 0, kind: input, shape index: {}]   ;;  %s565_s2 = inlined_call_operand.vmem [shape: f32[1,128], index: 2, kind: input, shape index: {}]   ;;  %s566_s3 = inlined_call_operand.vmem [shape: bf16[128,128], index: 3, kind: output, shape index: {}]  }
   0x1   :  { %v464_v0 = vld [vmem:[%s563_s1] sm:$0xff]   ;;  %v465_v1 = vld [vmem:[%s563_s1 + $0x8] sm:$0xff]   ;;  %v466_v2 = vld [vmem:[%s563_s1 + $0x10] ss:$0 sps:$4 sm:$0x33]  }
   0x2   :  { %434 = vmatprep.subr.bf16.mxu0 %v464_v0  ;;  %456 = vmatprep.subr.bf16.mxu1 %v464_v0  ;;  %v467_v3 = vld [vmem:[%s564_s0] sm:$0xff]   ;;  %v125_v5 = vsel %vm123_vm1, %v466_v2, 0  ;;  %v469_v6 = vld [vmem:[%s564_s0 + $0x8] sm:$0xff]   ;;  %v471_v8 = vld [vmem:[%s564_s0 + $0x10] sm:$0xff]  }
   0x3   :  { %435 = vmatpush3.bf16.msra.mxu0 %v464_v0  ;;  %459 = vmatpush3.bf16.msra.mxu1 %v464_v0  ;;  %v468_v4 = vld [vmem:[%s564_s0 + $0x20] sm:$0xff]   ;;  %v470_v7 = vld [vmem:[%s564_s0 + $0x28] sm:$0xff]   ;;  %v472_v9 = vld [vmem:[%s564_s0 + $0x30] sm:$0xff]  }
   0x4   :  { %436 = vmatprep.subr.bf16.mxu0 %v465_v1  ;;  %457 = vmatprep.subr.bf16.mxu1 %v465_v1  ;;  %v473_v10 = vld [vmem:[%s564_s0 + $0x18] sm:$0xff]   ;;  %v324_v12 = vld [vmem:[%s565_s2] ss:$0 sm:$0xff] }
   0x5   :  { %440 = vmatprep.mubr.msk.bf16.mxu0 %vm98_vm0, %v467_v3  ;;  %448 = vmatprep.mubr.msk.bf16.mxu1 %vm98_vm0, %v468_v4  ;;  %v474_v11 = vld [vmem:[%s564_s0 + $0x38] sm:$0xff]  }
   0x7   :  { %437 = vmatpush3.bf16.msra.mxu0 %v465_v1  ;;  %460 = vmatpush3.bf16.msra.mxu1 %v465_v1 }
   0x8   :  { %462 = vmatprep.subr.msk.bf16.mxu0 %vm123_vm1, %v466_v2  ;;  %463 = vmatprep.subr.msk.bf16.mxu1 %vm123_vm1, %v466_v2 }
   0xb   :  { %439 = vmatpush3.bf16.msra.mxu0 %v125_v5  ;;  %461 = vmatpush3.bf16.msra.mxu1 %v125_v5 }
   0xe   :  { %441 = vmatmul.mubr.msk.bf16.vlgmr.msra.gmra.mrb[0].mxu0 %vm98_vm0, %v469_v6  ;;  %449 = vmatmul.mubr.msk.bf16.vlgmr.msra.gmra.mrb[0].mxu1 %vm98_vm0, %v470_v7 }
   0xf   :  { %444 = vmatprep.mubr.msk.bf16.mxu0 %vm98_vm0, %v471_v8  ;;  %452 = vmatprep.mubr.msk.bf16.mxu1 %vm98_vm0, %v472_v9 }
  0x16   :  { %445 = vmatmul.mubr.msk.bf16.gmra.mrb[4].mxu0 %vm98_vm0, %v473_v10  ;;  %453 = vmatmul.mubr.msk.bf16.gmra.mrb[4].mxu1 %vm98_vm0, %v474_v11 }
  0xe1   :  { %v442_v13 = vpop.f32.mrb[0].mxu0  ;;  %v450_v14 = vpop.f32.mrb[0].mxu1 }
  0xe2   :  { %v170_v15 = vadd.f32 %v442_v13, %v324_v12  ;;  %v202_v16 = vadd.f32 %v450_v14, %v324_v12  ;;  %v161_v17 = vpop.f32.mrb[1].mxu0  ;;  %v193_v18 = vpop.f32.mrb[1].mxu1 }
  0xe3   :  { %v162_v19 = vadd.f32 %v324_v12, %v161_v17  ;;  %v194_v20 = vadd.f32 %v324_v12, %v193_v18  ;;  %v443_v21 = vpop.f32.mrb[2].mxu0  ;;  %v451_v22 = vpop.f32.mrb[2].mxu1 }
  0xe4   :  { %v173_v23 = vadd.f32 %v443_v21, %v324_v12  ;;  %v205_v24 = vadd.f32 %v451_v22, %v324_v12  ;;  %v164_v25 = vpop.f32.mrb[3].mxu0  ;;  %v196_v26 = vpop.f32.mrb[3].mxu1  ;;  %v226_v29 = vmax.f32 %v170_v15, 0.0  ;;  %v234_v30 = vmax.f32 %v202_v16, 0.0 }
  0xe5   :  { %v165_v27 = vadd.f32 %v324_v12, %v164_v25  ;;  %v197_v28 = vadd.f32 %v324_v12, %v196_v26  ;;  %v224_v33 = vmax.f32 %v162_v19, 0.0  ;;  %v232_v34 = vmax.f32 %v194_v20, 0.0 }
  0xe6   :  { %v227_v31 = vmax.f32 %v173_v23, 0.0  ;;  %v235_v32 = vmax.f32 %v205_v24, 0.0 }
  0xe7   :  { %v225_v35 = vmax.f32 %v165_v27, 0.0  ;;  %v233_v36 = vmax.f32 %v197_v28, 0.0 }
  0xe8   :  { %v384_v37 = vpack.c.bf16 %v227_v31, %v226_v29  ;;  %v404_v38 = vpack.c.bf16 %v235_v32, %v234_v30 }
  0xe9   :  { %v379_v39 = vpack.c.bf16 %v225_v35, %v224_v33  ;;  %v399_v40 = vpack.c.bf16 %v233_v36, %v232_v34  ;;  %v446_v41 = vpop.f32.mrb[4].mxu0  ;;  %v454_v42 = vpop.f32.mrb[4].mxu1 }
  0xea   :  { %416 = vst [vmem:[%s566_s3 + $0x8] sm:$0xff] %v384_v37   ;;  %420 = vst [vmem:[%s566_s3 + $0x28] sm:$0xff] %v404_v38   ;;  %v186_v43 = vadd.f32 %v446_v41, %v324_v12  ;;  %v218_v44 = vadd.f32 %v454_v42, %v324_v12  ;;  %v177_v45 = vpop.f32.mrb[5].mxu0  ;;  %v209_v46 = vpop.f32.mrb[5].mxu1 }
  0xeb   :  { %380 = vst [vmem:[%s566_s3] sm:$0xff] %v379_v39   ;;  %419 = vst [vmem:[%s566_s3 + $0x20] sm:$0xff] %v399_v40   ;;  %v178_v47 = vadd.f32 %v324_v12, %v177_v45  ;;  %v210_v48 = vadd.f32 %v324_v12, %v209_v46  ;;  %v447_v49 = vpop.f32.mrb[6].mxu0  ;;  %v455_v50 = vpop.f32.mrb[6].mxu1 }
  0xec   :  { %v189_v51 = vadd.f32 %v447_v49, %v324_v12  ;;  %v221_v52 = vadd.f32 %v455_v50, %v324_v12  ;;  %v180_v53 = vpop.f32.mrb[7].mxu0  ;;  %v212_v54 = vpop.f32.mrb[7].mxu1  ;;  %v230_v57 = vmax.f32 %v186_v43, 0.0  ;;  %v238_v58 = vmax.f32 %v218_v44, 0.0 }
  0xed   :  { %v181_v55 = vadd.f32 %v324_v12, %v180_v53  ;;  %v213_v56 = vadd.f32 %v324_v12, %v212_v54  ;;  %v228_v61 = vmax.f32 %v178_v47, 0.0  ;;  %v236_v62 = vmax.f32 %v210_v48, 0.0 }
  0xee   :  { %v231_v59 = vmax.f32 %v189_v51, 0.0  ;;  %v239_v60 = vmax.f32 %v221_v52, 0.0 }
  0xef   :  { %v229_v63 = vmax.f32 %v181_v55, 0.0  ;;  %v237_v0 = vmax.f32 %v213_v56, 0.0 }
  0xf0   :  { %v394_v1 = vpack.c.bf16 %v231_v59, %v230_v57  ;;  %v414_v2 = vpack.c.bf16 %v239_v60, %v238_v58 }
  0xf1   :  { %v389_v3 = vpack.c.bf16 %v229_v63, %v228_v61  ;;  %v409_v4 = vpack.c.bf16 %v237_v0, %v236_v62 }
  0xf2   :  { %418 = vst [vmem:[%s566_s3 + $0x18] sm:$0xff] %v394_v1   ;;  %422 = vst [vmem:[%s566_s3 + $0x38] sm:$0xff] %v414_v2  }
  0xf3   :  { %417 = vst [vmem:[%s566_s3 + $0x10] sm:$0xff] %v389_v3   ;;  %421 = vst [vmem:[%s566_s3 + $0x30] sm:$0xff] %v409_v4  }

// kernel: tile.8
= control target key start
LH: loop header
LB: loop body
LE: loop exit
PB: predicated region body
PF: predicated region fallthrough
CT: control target
= control target key end

     0   :  { %s22_s0 = inlined_call_operand.vmem [shape: f32[16], index: 0, kind: input, shape index: {}]   ;;  %s23_s1 = inlined_call_operand.vmem [shape: f32[4,16], index: 1, kind: output, shape index: {}]  }
   0x1   :  { %v4_v0 = vld [vmem:[%s22_s0] ss:$0 sm:$0xff] }
   0x2   :  { %5 = vst [vmem:[%s23_s1] sm:$0xf] %v4_v0 }

// kernel: tile.9
= control target key start
LH: loop header
LB: loop body
LE: loop exit
PB: predicated region body
PF: predicated region fallthrough
CT: control target
= control target key end

     0   :  { %vm7_vm0 = vcmask 130048   ;;  %s37_s8 = smov 16   ;;  %s38_s9 = smov 32   ;;  %vm13_vm1 = vcmask 523648   ;;  %vm19_vm2 = vcmask 392448   ;;  %vm25_vm3 = vcmask 261248   ;;  %s55_s0 = inlined_call_operand.vmem [shape: f32[4,16], index: 0, kind: input, shape index: {}]   ;;  %s56_s1 = inlined_call_operand.vmem [shape: f32[1,64], index: 1, kind: output, shape index: {}]  }
   0x1   :  { %v4_v0 = vld [vmem:[%s55_s0] sm:$0xf]  ;;  %s36_s0 = smov 48  }
   0x2   :  { %5 = vst [vmem:[#allocation1] sm:$0xf] %v4_v0 }
   0x9   :  { %v10_v1 = vld [vmem:[#allocation1 + $0x3] sm:$0x1]   ;;  %v22_v2 = vld [vmem:[#allocation1 + $0x1] sm:$0x1]   ;;  %v6_v3 = vld [vmem:[#allocation1] sm:$0x1]  }
   0xa   :  { %11 = vrot.lane.b32.xlu0 %v10_v1, %s36_s0  ;;  %23 = vrot.lane.b32.xlu1 %v22_v2, %s37_s8  ;;  %v16_v4 = vld [vmem:[#allocation1 + $0x2] sm:$0x1]   ;;  %8 = vst.msk [vmem:[#allocation0] sm:$0x1] %vm7_vm0, %v6_v3  }
   0xe   :  { %17 = vrot.lane.b32.xlu0 %v16_v4, %s38_s9 }
  0x7c   :  { %v12_v5 = vpop.permute.xlu0 %11   ;;  %v24_v6 = vpop.permute.xlu1 %23  }
  0x7d   :  { %14 = vst.msk [vmem:[#allocation0] sm:$0x1] %vm13_vm1, %v12_v5  }
  0x80   :  { %v18_v7 = vpop.permute.xlu0 %17  }
  0x81   :  { %20 = vst.msk [vmem:[#allocation0] sm:$0x1] %vm19_vm2, %v18_v7  }
  0x82   :  { %26 = vst.msk [vmem:[#allocation0] sm:$0x1] %vm25_vm3, %v24_v6  }
  0x89   :  { %v30_v8 = vld [vmem:[#allocation0] sm:$0x1] }
  0x8a   :  { %32 = vst [vmem:[%s56_s1] sm:$0x1] %v30_v8 }

// kernel: efficientnet_convt_forward.8
= control target key start
LH: loop header
LB: loop body
LE: loop exit
PB: predicated region body
PF: predicated region fallthrough
CT: control target
= control target key end

     0   :  { %vm52_vm0 = vcmask 261120   ;;  %s219_s1 = inlined_call_operand.vmem [shape: bf16[32,128], index: 1, kind: input, shape index: {}]   ;;  %s220_s0 = inlined_call_operand.vmem [shape: bf16[32,32], index: 0, kind: input, shape index: {}]   ;;  %s221_s2 = inlined_call_operand.vmem [shape: f32[1,128], index: 2, kind: input, shape index: {}]   ;;  %s222_s3 = inlined_call_operand.vmem [shape: bf16[32,128], index: 3, kind: output, shape index: {}]  }
   0x1   :  { %v174_v0 = vld [vmem:[%s219_s1] sm:$0xff]   ;;  %v175_v1 = vld [vmem:[%s219_s1 + $0x8] sm:$0xff]  }
   0x2   :  { %166 = vmatprep.subr.bf16.mxu0 %v174_v0  ;;  %v176_v2 = vld [vmem:[%s220_s0] sm:$0xff]   ;;  %v177_v3 = vld [vmem:[%s220_s0 + $0x8] sm:$0xff]  }
   0x3   :  { %167 = vmatpush3.bf16.msra.mxu0 %v174_v0  ;;  %170 = vmatprep.mubr.msk.bf16.mxu0 %vm52_vm0, %v176_v2  ;;  %v136_v4 = vld [vmem:[%s221_s2] ss:$0 sm:$0xff] }
   0x4   :  { %168 = vmatprep.subr.bf16.mxu0 %v175_v1 }
   0x7   :  { %169 = vmatpush3.bf16.msra.mxu0 %v175_v1 }
   0xa   :  { %171 = vmatmul.mubr.msk.bf16.vlgmr.msra.gmra.mrb[0].mxu0 %vm52_vm0, %v177_v3 }
  0xdd   :  { %v172_v5 = vpop.f32.mrb[0].mxu0 }
  0xde   :  { %v102_v6 = vadd.f32 %v172_v5, %v136_v4  ;;  %v93_v7 = vpop.f32.mrb[1].mxu0 }
  0xdf   :  { %v94_v8 = vadd.f32 %v136_v4, %v93_v7  ;;  %v173_v9 = vpop.f32.mrb[2].mxu0 }
  0xe0   :  { %v105_v10 = vadd.f32 %v173_v9, %v136_v4  ;;  %v96_v11 = vpop.f32.mrb[3].mxu0  ;;  %v110_v13 = vmax.f32 %v102_v6, 0.0 }
  0xe1   :  { %v97_v12 = vadd.f32 %v136_v4, %v96_v11  ;;  %v108_v15 = vmax.f32 %v94_v8, 0.0 }
  0xe2   :  { %v111_v14 = vmax.f32 %v105_v10, 0.0 }
  0xe3   :  { %v109_v16 = vmax.f32 %v97_v12, 0.0 }
  0xe4   :  { %v159_v17 = vpack.c.bf16 %v111_v14, %v110_v13 }
  0xe5   :  { %v154_v18 = vpack.c.bf16 %v109_v16, %v108_v15 }
  0xe6   :  { %161 = vst [vmem:[%s222_s3 + $0x8] sm:$0xff] %v159_v17  }
  0xe7   :  { %155 = vst [vmem:[%s222_s3] sm:$0xff] %v154_v18  }

// kernel: efficientnet_convt_forward.7
= control target key start
LH: loop header
LB: loop body
LE: loop exit
PB: predicated region body
PF: predicated region fallthrough
CT: control target
= control target key end

     0   :  { %v269_v0 = vmov 0   ;;  %vm116_vm0 = vcmask 130048   ;;  %s338_s1 = inlined_call_operand.vmem [shape: bf16[144,128], index: 1, kind: input, shape index: {}]   ;;  %s339_s0 = inlined_call_operand.vmem [shape: bf16[32,144], index: 0, kind: input, shape index: {}]   ;;  %s340_s2 = inlined_call_operand.vmem [shape: f32[1,128], index: 2, kind: input, shape index: {}]   ;;  %s341_s3 = inlined_call_operand.vmem [shape: bf16[32,128], index: 3, kind: output, shape index: {}]  }
   0x1   :  { %123 = vmatprep.subr.bf16.mxu0 %v269_v0  ;;  %235 = vmatprep.subr.bf16.mxu1 %v269_v0  ;;  %v254_v1 = vld [vmem:[%s338_s1] sm:$0xff]   ;;  %v255_v2 = vld [vmem:[%s338_s1 + $0x8] sm:$0xff]   ;;  %v256_v3 = vld [vmem:[%s338_s1 + $0x10] sm:$0xff]  }
   0x2   :  { %124 = vmatpush1.bf16.msra.mxu0 %v254_v1  ;;  %244 = vmatpush1.bf16.msra.mxu1 %v254_v1  ;;  %v257_v4 = vld [vmem:[%s338_s1 + $0x18] sm:$0xff]   ;;  %v265_v5 = vld [vmem:[%s339_s0 + $0x4] ss:$8 sps:$4 sm:$0xff]   ;;  %v260_v9 = vld [vmem:[%s338_s1 + $0x30] sm:$0xff]  }
   0x3   :  { %125 = vmatprep.subr.bf16.mxu0 %v269_v0  ;;  %236 = vmatprep.subr.bf16.mxu1 %v269_v0  ;;  %v268_v6 = vld [vmem:[%s339_s0 + $0x14] ss:$8 sps:$4 sm:$0xff]   ;;  %v258_v7 = vld [vmem:[%s338_s1 + $0x20] sm:$0xff]   ;;  %v259_v8 = vld [vmem:[%s338_s1 + $0x28] sm:$0xff]  }
   0x4   :  { %214 = vmatprep.mubr.msk.bf16.mxu0 %vm116_vm0, %v265_v5  ;;  %215 = vmatprep.mubr.msk.bf16.mxu1 %vm116_vm0, %v268_v6  ;;  %v261_v10 = vld [vmem:[%s338_s1 + $0x38] sm:$0xff]   ;;  %v262_v11 = vld [vmem:[%s338_s1 + $0x40] sm:$0xff]  }
   0x5   :  { %v263_v12 = vld [vmem:[%s339_s0] ss:$8 sps:$4 sm:$0xff]   ;;  %v266_v13 = vld [vmem:[%s339_s0 + $0x10] ss:$8 sps:$4 sm:$0xff]  }
   0x6   :  { %126 = vmatpush1.bf16.msra.mxu0 %v255_v2  ;;  %245 = vmatpush1.bf16.msra.mxu1 %v255_v2  ;;  %v200_v14 = vld [vmem:[%s340_s2] ss:$0 sm:$0xff] }
   0x7   :  { %127 = vmatprep.subr.bf16.mxu0 %v269_v0  ;;  %237 = vmatprep.subr.bf16.mxu1 %v269_v0 }
   0xa   :  { %128 = vmatpush1.bf16.msra.mxu0 %v256_v3  ;;  %246 = vmatpush1.bf16.msra.mxu1 %v256_v3 }
   0xb   :  { %129 = vmatprep.subr.bf16.mxu0 %v269_v0  ;;  %238 = vmatprep.subr.bf16.mxu1 %v269_v0 }
   0xe   :  { %130 = vmatpush1.bf16.msra.mxu0 %v257_v4  ;;  %247 = vmatpush1.bf16.msra.mxu1 %v257_v4 }
   0xf   :  { %131 = vmatprep.subr.bf16.mxu0 %v269_v0  ;;  %239 = vmatprep.subr.bf16.mxu1 %v269_v0 }
  0x12   :  { %132 = vmatpush1.bf16.msra.mxu0 %v258_v7  ;;  %248 = vmatpush1.bf16.msra.mxu1 %v258_v7 }
  0x13   :  { %133 = vmatprep.subr.bf16.mxu0 %v269_v0  ;;  %240 = vmatprep.subr.bf16.mxu1 %v269_v0 }
  0x16   :  { %134 = vmatpush1.bf16.msra.mxu0 %v259_v8  ;;  %249 = vmatpush1.bf16.msra.mxu1 %v259_v8 }
  0x17   :  { %135 = vmatprep.subr.bf16.mxu0 %v269_v0  ;;  %241 = vmatprep.subr.bf16.mxu1 %v269_v0 }
  0x1a   :  { %136 = vmatpush1.bf16.msra.mxu0 %v260_v9  ;;  %250 = vmatpush1.bf16.msra.mxu1 %v260_v9 }
  0x1b   :  { %137 = vmatprep.subr.bf16.mxu0 %v269_v0  ;;  %242 = vmatprep.subr.bf16.mxu1 %v269_v0 }
  0x1e   :  { %138 = vmatpush1.bf16.msra.mxu0 %v261_v10  ;;  %251 = vmatpush1.bf16.msra.mxu1 %v261_v10 }
  0x1f   :  { %139 = vmatprep.subr.bf16.mxu0 %v269_v0  ;;  %243 = vmatprep.subr.bf16.mxu1 %v269_v0 }
  0x22   :  { %140 = vmatpush1.bf16.msra.mxu0 %v262_v11  ;;  %252 = vmatpush1.bf16.msra.mxu1 %v262_v11 }
  0x25   :  { %156 = vmatmul.mubr.bf16.vlgmr.msra.gmra.mrb[0].mxu0 %v263_v12  ;;  %164 = vmatmul.mubr.bf16.vlgmr.msra.gmra.mrb[0].mxu1 %v266_v13 }
  0xf8   :  { %v157_v15 = vpop.f32.mrb[0].mxu0  ;;  %v165_v16 = vpop.f32.mrb[0].mxu1 }
  0xf9   :  { %v158_v17 = vadd.f32 %v200_v14, %v157_v15  ;;  %v166_v18 = vadd.f32 %v200_v14, %v165_v16  ;;  %v159_v19 = vpop.f32.mrb[1].mxu0  ;;  %v167_v20 = vpop.f32.mrb[1].mxu1 }
  0xfa   :  { %v160_v21 = vpop.f32.mrb[2].mxu0  ;;  %v168_v22 = vpop.f32.mrb[2].mxu1 }
  0xfb   :  { %v161_v23 = vadd.f32 %v200_v14, %v160_v21  ;;  %v169_v24 = vadd.f32 %v200_v14, %v168_v22  ;;  %v162_v25 = vpop.f32.mrb[3].mxu0  ;;  %v170_v26 = vpop.f32.mrb[3].mxu1  ;;  %v172_v27 = vmax.f32 %v158_v17, 0.0  ;;  %v174_v28 = vmax.f32 %v166_v18, 0.0 }
  0xfd   :  { %v173_v29 = vmax.f32 %v161_v23, 0.0  ;;  %v175_v30 = vmax.f32 %v169_v24, 0.0 }
  0xff   :  { %v227_v31 = vpack.c.bf16 %v173_v29, %v172_v27  ;;  %v232_v32 = vpack.c.bf16 %v175_v30, %v174_v28 }
 0x101   :  { %228 = vst [vmem:[%s341_s3] sm:$0xff] %v227_v31   ;;  %234 = vst [vmem:[%s341_s3 + $0x8] sm:$0xff] %v232_v32  }

// kernel: efficientnet_convt_forward.9
= control target key start
LH: loop header
LB: loop body
LE: loop exit
PB: predicated region body
PF: predicated region fallthrough
CT: control target
= control target key end

     0   :  { %v569_v0 = vmov 0   ;;  %vm182_vm0 = vcmask 130048   ;;  %s718_s1 = inlined_call_operand.vmem [shape: bf16[144,128], index: 1, kind: input, shape index: {}]   ;;  %s719_s0 = inlined_call_operand.vmem [shape: bf16[128,144], index: 0, kind: input, shape index: {}]   ;;  %s720_s2 = inlined_call_operand.vmem [shape: f32[1,128], index: 2, kind: input, shape index: {}]   ;;  %s721_s3 = inlined_call_operand.vmem [shape: bf16[128,128], index: 3, kind: output, shape index: {}]  }
   0x1   :  { %207 = vmatprep.subr.bf16.mxu0 %v569_v0  ;;  %517 = vmatprep.subr.bf16.mxu1 %v569_v0  ;;  %v536_v1 = vld [vmem:[%s718_s1] sm:$0xff]   ;;  %v537_v2 = vld [vmem:[%s718_s1 + $0x8] sm:$0xff]   ;;  %v538_v3 = vld [vmem:[%s718_s1 + $0x10] sm:$0xff]  }
   0x2   :  { %208 = vmatpush1.bf16.msra.mxu0 %v536_v1  ;;  %526 = vmatpush1.bf16.msra.mxu1 %v536_v1  ;;  %v539_v4 = vld [vmem:[%s718_s1 + $0x18] sm:$0xff]   ;;  %v547_v5 = vld [vmem:[%s719_s0 + $0x4] ss:$8 sps:$4 sm:$0xff]   ;;  %v542_v9 = vld [vmem:[%s718_s1 + $0x30] sm:$0xff]  }
   0x3   :  { %209 = vmatprep.subr.bf16.mxu0 %v569_v0  ;;  %518 = vmatprep.subr.bf16.mxu1 %v569_v0  ;;  %v550_v6 = vld [vmem:[%s719_s0 + $0x44] ss:$8 sps:$4 sm:$0xff]   ;;  %v543_v10 = vld [vmem:[%s718_s1 + $0x38] sm:$0xff]   ;;  %v545_v12 = vld [vmem:[%s719_s0] ss:$8 sps:$4 sm:$0xff]  }
   0x4   :  { %430 = vmatprep.mubr.msk.bf16.mxu0 %vm182_vm0, %v547_v5  ;;  %434 = vmatprep.mubr.msk.bf16.mxu1 %vm182_vm0, %v550_v6  ;;  %v540_v7 = vld [vmem:[%s718_s1 + $0x20] sm:$0xff]   ;;  %v541_v8 = vld [vmem:[%s718_s1 + $0x28] sm:$0xff]   ;;  %v551_v14 = vld [vmem:[%s719_s0 + $0x14] ss:$8 sps:$4 sm:$0xff]  }
   0x5   :  { %v544_v11 = vld [vmem:[%s718_s1 + $0x40] sm:$0xff]   ;;  %v553_v15 = vld [vmem:[%s719_s0 + $0x54] ss:$8 sps:$4 sm:$0xff]   ;;  %v555_v16 = vld [vmem:[%s719_s0 + $0x10] ss:$8 sps:$4 sm:$0xff]  }
   0x6   :  { %210 = vmatpush1.bf16.msra.mxu0 %v537_v2  ;;  %527 = vmatpush1.bf16.msra.mxu1 %v537_v2  ;;  %v548_v13 = vld [vmem:[%s719_s0 + $0x40] ss:$8 sps:$4 sm:$0xff]   ;;  %v556_v17 = vld [vmem:[%s719_s0 + $0x50] ss:$8 sps:$4 sm:$0xff]   ;;  %v557_v18 = vld [vmem:[%s719_s0 + $0x24] ss:$8 sps:$4 sm:$0xff]  }
   0x7   :  { %211 = vmatprep.subr.bf16.mxu0 %v569_v0  ;;  %519 = vmatprep.subr.bf16.mxu1 %v569_v0  ;;  %v559_v19 = vld [vmem:[%s719_s0 + $0x64] ss:$8 sps:$4 sm:$0xff]   ;;  %v561_v20 = vld [vmem:[%s719_s0 + $0x20] ss:$8 sps:$4 sm:$0xff]   ;;  %v563_v22 = vld [vmem:[%s719_s0 + $0x34] ss:$8 sps:$4 sm:$0xff]  }
   0x8   :  { %v562_v21 = vld [vmem:[%s719_s0 + $0x60] ss:$8 sps:$4 sm:$0xff]   ;;  %v565_v23 = vld [vmem:[%s719_s0 + $0x74] ss:$8 sps:$4 sm:$0xff]   ;;  %v567_v24 = vld [vmem:[%s719_s0 + $0x30] ss:$8 sps:$4 sm:$0xff]  }
   0x9   :  { %v568_v25 = vld [vmem:[%s719_s0 + $0x70] ss:$8 sps:$4 sm:$0xff]   ;;  %v676_v26 = vld [vmem:[%s720_s2] ss:$0 sm:$0xff] }
   0xa   :  { %212 = vmatpush1.bf16.msra.mxu0 %v538_v3  ;;  %528 = vmatpush1.bf16.msra.mxu1 %v538_v3 }
   0xb   :  { %213 = vmatprep.subr.bf16.mxu0 %v569_v0  ;;  %520 = vmatprep.subr.bf16.mxu1 %v569_v0 }
   0xe   :  { %214 = vmatpush1.bf16.msra.mxu0 %v539_v4  ;;  %529 = vmatpush1.bf16.msra.mxu1 %v539_v4 }
   0xf   :  { %215 = vmatprep.subr.bf16.mxu0 %v569_v0  ;;  %521 = vmatprep.subr.bf16.mxu1 %v569_v0 }
  0x12   :  { %216 = vmatpush1.bf16.msra.mxu0 %v540_v7  ;;  %530 = vmatpush1.bf16.msra.mxu1 %v540_v7 }
  0x13   :  { %217 = vmatprep.subr.bf16.mxu0 %v569_v0  ;;  %522 = vmatprep.subr.bf16.mxu1 %v569_v0 }
  0x16   :  { %218 = vmatpush1.bf16.msra.mxu0 %v541_v8  ;;  %531 = vmatpush1.bf16.msra.mxu1 %v541_v8 }
  0x17   :  { %219 = vmatprep.subr.bf16.mxu0 %v569_v0  ;;  %523 = vmatprep.subr.bf16.mxu1 %v569_v0 }
  0x1a   :  { %220 = vmatpush1.bf16.msra.mxu0 %v542_v9  ;;  %532 = vmatpush1.bf16.msra.mxu1 %v542_v9 }
  0x1b   :  { %221 = vmatprep.subr.bf16.mxu0 %v569_v0  ;;  %524 = vmatprep.subr.bf16.mxu1 %v569_v0 }
  0x1e   :  { %222 = vmatpush1.bf16.msra.mxu0 %v543_v10  ;;  %533 = vmatpush1.bf16.msra.mxu1 %v543_v10 }
  0x1f   :  { %223 = vmatprep.subr.bf16.mxu0 %v569_v0  ;;  %525 = vmatprep.subr.bf16.mxu1 %v569_v0 }
  0x22   :  { %224 = vmatpush1.bf16.msra.mxu0 %v544_v11  ;;  %534 = vmatpush1.bf16.msra.mxu1 %v544_v11 }
  0x25   :  { %240 = vmatmul.mubr.bf16.vlgmr.msra.gmra.mrb[0].mxu0 %v545_v12  ;;  %272 = vmatmul.mubr.bf16.vlgmr.msra.gmra.mrb[0].mxu1 %v548_v13 }
  0x26   :  { %431 = vmatprep.mubr.msk.bf16.mxu0 %vm182_vm0, %v551_v14  ;;  %435 = vmatprep.mubr.msk.bf16.mxu1 %vm182_vm0, %v553_v15 }
  0x2d   :  { %248 = vmatmul.mubr.bf16.gmra.mrb[4].mxu0 %v555_v16  ;;  %280 = vmatmul.mubr.bf16.gmra.mrb[4].mxu1 %v556_v17 }
  0x2e   :  { %432 = vmatprep.mubr.msk.bf16.mxu0 %vm182_vm0, %v557_v18  ;;  %436 = vmatprep.mubr.msk.bf16.mxu1 %vm182_vm0, %v559_v19 }
  0x35   :  { %256 = vmatmul.mubr.bf16.gmra.mrb[8].mxu0 %v561_v20  ;;  %288 = vmatmul.mubr.bf16.gmra.mrb[8].mxu1 %v562_v21 }
  0x36   :  { %433 = vmatprep.mubr.msk.bf16.mxu0 %vm182_vm0, %v563_v22  ;;  %437 = vmatprep.mubr.msk.bf16.mxu1 %vm182_vm0, %v565_v23 }
  0x3d   :  { %264 = vmatmul.mubr.bf16.gmra.mrb[12].mxu0 %v567_v24  ;;  %296 = vmatmul.mubr.bf16.gmra.mrb[12].mxu1 %v568_v25 }
  0xf8   :  { %v241_v27 = vpop.f32.mrb[0].mxu0  ;;  %v273_v28 = vpop.f32.mrb[0].mxu1 }
  0xf9   :  { %v242_v29 = vadd.f32 %v676_v26, %v241_v27  ;;  %v274_v30 = vadd.f32 %v676_v26, %v273_v28  ;;  %v243_v31 = vpop.f32.mrb[1].mxu0  ;;  %v275_v32 = vpop.f32.mrb[1].mxu1 }
  0xfa   :  { %v244_v33 = vpop.f32.mrb[2].mxu0  ;;  %v276_v34 = vpop.f32.mrb[2].mxu1 }
  0xfb   :  { %v245_v35 = vadd.f32 %v676_v26, %v244_v33  ;;  %v277_v36 = vadd.f32 %v676_v26, %v276_v34  ;;  %v246_v37 = vpop.f32.mrb[3].mxu0  ;;  %v278_v38 = vpop.f32.mrb[3].mxu1  ;;  %v304_v39 = vmax.f32 %v242_v29, 0.0  ;;  %v312_v40 = vmax.f32 %v274_v30, 0.0 }
  0xfd   :  { %v305_v41 = vmax.f32 %v245_v35, 0.0  ;;  %v313_v42 = vmax.f32 %v277_v36, 0.0 }
  0xff   :  { %v473_v43 = vpack.c.bf16 %v305_v41, %v304_v39  ;;  %v493_v44 = vpack.c.bf16 %v313_v42, %v312_v40 }
 0x100   :  { %v249_v45 = vpop.f32.mrb[4].mxu0  ;;  %v281_v46 = vpop.f32.mrb[4].mxu1 }
 0x101   :  { %474 = vst [vmem:[%s721_s3] sm:$0xff] %v473_v43   ;;  %513 = vst [vmem:[%s721_s3 + $0x20] sm:$0xff] %v493_v44   ;;  %v250_v47 = vadd.f32 %v676_v26, %v249_v45  ;;  %v282_v48 = vadd.f32 %v676_v26, %v281_v46  ;;  %v251_v49 = vpop.f32.mrb[5].mxu0  ;;  %v283_v50 = vpop.f32.mrb[5].mxu1 }
 0x102   :  { %v252_v51 = vpop.f32.mrb[6].mxu0  ;;  %v284_v52 = vpop.f32.mrb[6].mxu1 }
 0x103   :  { %v253_v53 = vadd.f32 %v676_v26, %v252_v51  ;;  %v285_v54 = vadd.f32 %v676_v26, %v284_v52  ;;  %v254_v55 = vpop.f32.mrb[7].mxu0  ;;  %v286_v56 = vpop.f32.mrb[7].mxu1  ;;  %v306_v57 = vmax.f32 %v250_v47, 0.0  ;;  %v314_v58 = vmax.f32 %v282_v48, 0.0 }
 0x105   :  { %v307_v59 = vmax.f32 %v253_v53, 0.0  ;;  %v315_v60 = vmax.f32 %v285_v54, 0.0 }
 0x107   :  { %v478_v61 = vpack.c.bf16 %v307_v59, %v306_v57  ;;  %v498_v62 = vpack.c.bf16 %v315_v60, %v314_v58 }
 0x108   :  { %v257_v63 = vpop.f32.mrb[8].mxu0  ;;  %v289_v0 = vpop.f32.mrb[8].mxu1 }
 0x109   :  { %510 = vst [vmem:[%s721_s3 + $0x8] sm:$0xff] %v478_v61   ;;  %514 = vst [vmem:[%s721_s3 + $0x28] sm:$0xff] %v498_v62   ;;  %v258_v1 = vadd.f32 %v676_v26, %v257_v63  ;;  %v290_v2 = vadd.f32 %v676_v26, %v289_v0  ;;  %v259_v3 = vpop.f32.mrb[9].mxu0  ;;  %v291_v4 = vpop.f32.mrb[9].mxu1 }
 0x10a   :  { %v260_v5 = vpop.f32.mrb[10].mxu0  ;;  %v292_v6 = vpop.f32.mrb[10].mxu1 }
 0x10b   :  { %v261_v7 = vadd.f32 %v676_v26, %v260_v5  ;;  %v293_v8 = vadd.f32 %v676_v26, %v292_v6  ;;  %v262_v9 = vpop.f32.mrb[11].mxu0  ;;  %v294_v10 = vpop.f32.mrb[11].mxu1  ;;  %v308_v11 = vmax.f32 %v258_v1, 0.0  ;;  %v316_v12 = vmax.f32 %v290_v2, 0.0 }
 0x10d   :  { %v309_v13 = vmax.f32 %v261_v7, 0.0  ;;  %v317_v14 = vmax.f32 %v293_v8, 0.0 }
 0x10f   :  { %v483_v15 = vpack.c.bf16 %v309_v13, %v308_v11  ;;  %v503_v16 = vpack.c.bf16 %v317_v14, %v316_v12 }
 0x110   :  { %v265_v17 = vpop.f32.mrb[12].mxu0  ;;  %v297_v18 = vpop.f32.mrb[12].mxu1 }
 0x111   :  { %511 = vst [vmem:[%s721_s3 + $0x10] sm:$0xff] %v483_v15   ;;  %515 = vst [vmem:[%s721_s3 + $0x30] sm:$0xff] %v503_v16   ;;  %v266_v19 = vadd.f32 %v676_v26, %v265_v17  ;;  %v298_v20 = vadd.f32 %v676_v26, %v297_v18  ;;  %v267_v21 = vpop.f32.mrb[13].mxu0  ;;  %v299_v22 = vpop.f32.mrb[13].mxu1 }
 0x112   :  { %v268_v23 = vpop.f32.mrb[14].mxu0  ;;  %v300_v24 = vpop.f32.mrb[14].mxu1 }
 0x113   :  { %v269_v25 = vadd.f32 %v676_v26, %v268_v23  ;;  %v301_v27 = vadd.f32 %v676_v26, %v300_v24  ;;  %v270_v28 = vpop.f32.mrb[15].mxu0  ;;  %v302_v29 = vpop.f32.mrb[15].mxu1  ;;  %v310_v30 = vmax.f32 %v266_v19, 0.0  ;;  %v318_v31 = vmax.f32 %v298_v20, 0.0 }
 0x115   :  { %v311_v32 = vmax.f32 %v269_v25, 0.0  ;;  %v319_v33 = vmax.f32 %v301_v27, 0.0 }
 0x117   :  { %v488_v34 = vpack.c.bf16 %v311_v32, %v310_v30  ;;  %v508_v35 = vpack.c.bf16 %v319_v33, %v318_v31 }
 0x119   :  { %512 = vst [vmem:[%s721_s3 + $0x18] sm:$0xff] %v488_v34   ;;  %516 = vst [vmem:[%s721_s3 + $0x38] sm:$0xff] %v508_v35  }

// kernel: efficientnet_convt_forward.10
= control target key start
LH: loop header
LB: loop body
LE: loop exit
PB: predicated region body
PF: predicated region fallthrough
CT: control target
= control target key end

     0   :  { %vm102_vm0 = vcmask 392192   ;;  %v225_v60 = vlaneseq  ;;  %s741_s1 = inlined_call_operand.vmem [shape: bf16[48,128], index: 1, kind: input, shape index: {}]   ;;  %s742_s0 = inlined_call_operand.vmem [shape: bf16[128,48], index: 0, kind: input, shape index: {}]   ;;  %s743_s2 = inlined_call_operand.vmem [shape: f32[1,128], index: 2, kind: input, shape index: {}]   ;;  %s744_s3 = inlined_call_operand.vmem [shape: f32[128,128], index: 3, kind: output, shape index: {}]  }
   0x1   :  { %v437_v0 = vld [vmem:[%s741_s1] sm:$0xff]   ;;  %v438_v1 = vld [vmem:[%s741_s1 + $0x8] sm:$0xff]   ;;  %v439_v2 = vld [vmem:[%s741_s1 + $0x10] sm:$0xff]  }
   0x2   :  { %409 = vmatprep.subr.bf16.mxu0 %v437_v0  ;;  %431 = vmatprep.subr.bf16.mxu1 %v437_v0  ;;  %v440_v3 = vld [vmem:[%s742_s0] sm:$0xff]   ;;  %v442_v5 = vld [vmem:[%s742_s0 + $0x8] sm:$0xff]   ;;  %v444_v7 = vld [vmem:[%s742_s0 + $0x10] sm:$0xff]  }
   0x3   :  { %410 = vmatpush3.bf16.msra.mxu0 %v437_v0  ;;  %434 = vmatpush3.bf16.msra.mxu1 %v437_v0  ;;  %v441_v4 = vld [vmem:[%s742_s0 + $0x20] sm:$0xff]   ;;  %v443_v6 = vld [vmem:[%s742_s0 + $0x28] sm:$0xff]   ;;  %v445_v8 = vld [vmem:[%s742_s0 + $0x30] sm:$0xff]  }
   0x4   :  { %411 = vmatprep.subr.bf16.mxu0 %v438_v1  ;;  %432 = vmatprep.subr.bf16.mxu1 %v438_v1  ;;  %v446_v9 = vld [vmem:[%s742_s0 + $0x18] sm:$0xff]   ;;  %v576_v11 = vld [vmem:[%s743_s2] ss:$0 sm:$0xff] }
   0x5   :  { %415 = vmatprep.mubr.msk.bf16.mxu0 %vm102_vm0, %v440_v3  ;;  %423 = vmatprep.mubr.msk.bf16.mxu1 %vm102_vm0, %v441_v4  ;;  %v447_v10 = vld [vmem:[%s742_s0 + $0x38] sm:$0xff]  }
   0x7   :  { %412 = vmatpush3.bf16.msra.mxu0 %v438_v1  ;;  %435 = vmatpush3.bf16.msra.mxu1 %v438_v1 }
   0x8   :  { %413 = vmatprep.subr.bf16.mxu0 %v439_v2  ;;  %433 = vmatprep.subr.bf16.mxu1 %v439_v2 }
   0xb   :  { %414 = vmatpush3.bf16.msra.mxu0 %v439_v2  ;;  %436 = vmatpush3.bf16.msra.mxu1 %v439_v2 }
   0xe   :  { %416 = vmatmul.mubr.msk.bf16.vlgmr.msra.gmra.mrb[0].mxu0 %vm102_vm0, %v442_v5  ;;  %424 = vmatmul.mubr.msk.bf16.vlgmr.msra.gmra.mrb[0].mxu1 %vm102_vm0, %v443_v6  ;;  %v630_v5 = vand.u32 127, %v225_v60 }
   0xf   :  { %419 = vmatprep.mubr.msk.bf16.mxu0 %vm102_vm0, %v444_v7  ;;  %427 = vmatprep.mubr.msk.bf16.mxu1 %vm102_vm0, %v445_v8 }
  0x10   :  { %vm229_vm1 = vcmp.lt.s32.totalorder %v630_v5, 3 }
  0x16   :  { %420 = vmatmul.mubr.msk.bf16.gmra.mrb[4].mxu0 %vm102_vm0, %v446_v9  ;;  %428 = vmatmul.mubr.msk.bf16.gmra.mrb[4].mxu1 %vm102_vm0, %v447_v10 }
  0xe1   :  { %v417_v12 = vpop.f32.mrb[0].mxu0  ;;  %v425_v13 = vpop.f32.mrb[0].mxu1 }
  0xe2   :  { %v579_v14 = vadd.f32 %v417_v12, %v576_v11  ;;  %v582_v15 = vadd.f32 %v425_v13, %v576_v11  ;;  %v161_v16 = vpop.f32.mrb[1].mxu0  ;;  %v193_v17 = vpop.f32.mrb[1].mxu1 }
  0xe3   :  { %v585_v18 = vadd.f32 %v576_v11, %v161_v16  ;;  %v588_v19 = vadd.f32 %v576_v11, %v193_v17  ;;  %v418_v20 = vpop.f32.mrb[2].mxu0  ;;  %v426_v21 = vpop.f32.mrb[2].mxu1 }
  0xe4   :  { %v384_v22 = vmul.f32 -1.442695, %v579_v14  ;;  %v392_v23 = vmul.f32 -1.442695, %v582_v15  ;;  %v593_v24 = vadd.f32 %v418_v20, %v576_v11  ;;  %v596_v25 = vadd.f32 %v426_v21, %v576_v11  ;;  %v164_v26 = vpop.f32.mrb[3].mxu0  ;;  %v196_v27 = vpop.f32.mrb[3].mxu1 }
  0xe5   :  { %v382_v28 = vmul.f32 -1.442695, %v585_v18  ;;  %v390_v29 = vmul.f32 -1.442695, %v588_v19  ;;  %v601_v30 = vadd.f32 %v576_v11, %v164_v26  ;;  %v604_v31 = vadd.f32 %v576_v11, %v196_v27 }
  0xe6   :  { %448 = vpow2.f32 %v384_v22  ;;  %v385_v32 = vmul.f32 -1.442695, %v593_v24  ;;  %v393_v33 = vmul.f32 -1.442695, %v596_v25 }
  0xe7   :  { %450 = vpow2.f32 %v392_v23  ;;  %v383_v34 = vmul.f32 -1.442695, %v601_v30  ;;  %v391_v35 = vmul.f32 -1.442695, %v604_v31 }
  0xe8   :  { %452 = vpow2.f32 %v382_v28 }
  0xe9   :  { %454 = vpow2.f32 %v390_v29  ;;  %v421_v36 = vpop.f32.mrb[4].mxu0  ;;  %v429_v37 = vpop.f32.mrb[4].mxu1 }
  0xea   :  { %456 = vpow2.f32 %v385_v32  ;;  %v611_v38 = vadd.f32 %v421_v36, %v576_v11  ;;  %v614_v39 = vadd.f32 %v429_v37, %v576_v11  ;;  %v177_v40 = vpop.f32.mrb[5].mxu0  ;;  %v209_v41 = vpop.f32.mrb[5].mxu1 }
  0xeb   :  { %458 = vpow2.f32 %v393_v33  ;;  %v617_v42 = vadd.f32 %v576_v11, %v177_v40  ;;  %v620_v43 = vadd.f32 %v576_v11, %v209_v41  ;;  %v422_v44 = vpop.f32.mrb[6].mxu0  ;;  %v430_v45 = vpop.f32.mrb[6].mxu1 }
  0xec   :  { %460 = vpow2.f32 %v383_v34  ;;  %v388_v46 = vmul.f32 -1.442695, %v611_v38  ;;  %v396_v47 = vmul.f32 -1.442695, %v614_v39  ;;  %v625_v48 = vadd.f32 %v422_v44, %v576_v11  ;;  %v180_v49 = vpop.f32.mrb[7].mxu0  ;;  %v212_v50 = vpop.f32.mrb[7].mxu1 }
  0xed   :  { %462 = vpow2.f32 %v391_v35  ;;  %v386_v51 = vmul.f32 -1.442695, %v617_v42  ;;  %v394_v52 = vmul.f32 -1.442695, %v620_v43  ;;  %v633_v9 = vadd.f32 %v430_v45, %v576_v11 }
  0xee   :  { %464 = vpow2.f32 %v388_v46  ;;  %v389_v53 = vmul.f32 -1.442695, %v625_v48  ;;  %v636_v13 = vadd.f32 %v576_v11, %v180_v49  ;;  %v639_v20 = vadd.f32 %v576_v11, %v212_v50 }
  0xef   :  { %466 = vpow2.f32 %v396_v47  ;;  %v397_v27 = vmul.f32 -1.442695, %v633_v9 }
  0xf0   :  { %v449_v54 = vpop.eup %448  ;;  %468 = vpow2.f32 %v386_v51  ;;  %v387_v32 = vmul.f32 -1.442695, %v636_v13  ;;  %v395_v34 = vmul.f32 -1.442695, %v639_v20 }
  0xf1   :  { %v451_v55 = vpop.eup %450  ;;  %v280_v56 = vadd.f32 1.0, %v449_v54  ;;  %470 = vpow2.f32 %v394_v52 }
  0xf2   :  { %v453_v57 = vpop.eup %452  ;;  %v288_v58 = vadd.f32 1.0, %v451_v55  ;;  %472 = vpow2.f32 %v389_v53 }
  0xf3   :  { %v455_v59 = vpop.eup %454  ;;  %474 = vrcp.f32 %v280_v56  ;;  %v278_v61 = vadd.f32 1.0, %v453_v57 }
  0xf4   :  { %v457_v62 = vpop.eup %456  ;;  %476 = vrcp.f32 %v288_v58  ;;  %v286_v63 = vadd.f32 1.0, %v455_v59 }
  0xf5   :  { %v459_v0 = vpop.eup %458  ;;  %478 = vrcp.f32 %v278_v61  ;;  %v281_v1 = vadd.f32 1.0, %v457_v62 }
  0xf6   :  { %v461_v2 = vpop.eup %460  ;;  %480 = vrcp.f32 %v286_v63  ;;  %v289_v3 = vadd.f32 1.0, %v459_v0 }
  0xf7   :  { %v463_v4 = vpop.eup %462  ;;  %482 = vrcp.f32 %v281_v1  ;;  %v279_v6 = vadd.f32 1.0, %v461_v2 }
  0xf8   :  { %v465_v7 = vpop.eup %464  ;;  %484 = vrcp.f32 %v289_v3  ;;  %v287_v8 = vadd.f32 1.0, %v463_v4 }
  0xf9   :  { %v467_v10 = vpop.eup %466  ;;  %486 = vrcp.f32 %v279_v6  ;;  %v284_v12 = vadd.f32 1.0, %v465_v7 }
  0xfa   :  { %v469_v16 = vpop.eup %468  ;;  %488 = vrcp.f32 %v287_v8  ;;  %v292_v17 = vadd.f32 1.0, %v467_v10 }
  0xfb   :  { %v471_v21 = vpop.eup %470  ;;  %490 = vrcp.f32 %v284_v12  ;;  %v282_v22 = vadd.f32 1.0, %v469_v16 }
  0xfc   :  { %v473_v23 = vpop.eup %472  ;;  %492 = vrcp.f32 %v292_v17  ;;  %v290_v26 = vadd.f32 1.0, %v471_v21 }
  0xfd   :  { %v475_v28 = vpop.eup %474  ;;  %494 = vrcp.f32 %v282_v22  ;;  %v285_v29 = vadd.f32 1.0, %v473_v23 }
  0xfe   :  { %v477_v33 = vpop.eup %476  ;;  %v328_v11 = vsel %vm229_vm1, %v475_v28, %v579_v14  ;;  %496 = vrcp.f32 %v290_v26 }
  0xff   :  { %v479_v35 = vpop.eup %478  ;;  %344 = vst [vmem:[%s744_s3 + $0x10] sm:$0xff] %v328_v11  ;;  %v336_v36 = vsel %vm229_vm1, %v477_v33, %v582_v15  ;;  %498 = vrcp.f32 %v285_v29 }
 0x100   :  { %v481_v37 = vpop.eup %480  ;;  %352 = vst [vmem:[%s744_s3 + $0x50] sm:$0xff] %v336_v36  ;;  %v326_v14 = vsel %vm229_vm1, %v479_v35, %v585_v18  ;;  %500 = vpow2.f32 %v397_v27 }
 0x101   :  { %v483_v40 = vpop.eup %482  ;;  %342 = vst [vmem:[%s744_s3] sm:$0xff] %v326_v14  ;;  %v334_v15 = vsel %vm229_vm1, %v481_v37, %v588_v19  ;;  %502 = vpow2.f32 %v387_v32 }
 0x102   :  { %v485_v41 = vpop.eup %484  ;;  %350 = vst [vmem:[%s744_s3 + $0x40] sm:$0xff] %v334_v15  ;;  %v329_v18 = vsel %vm229_vm1, %v483_v40, %v593_v24  ;;  %504 = vpow2.f32 %v395_v34 }
 0x103   :  { %v487_v44 = vpop.eup %486  ;;  %345 = vst [vmem:[%s744_s3 + $0x18] sm:$0xff] %v329_v18  ;;  %v337_v19 = vsel %vm229_vm1, %v485_v41, %v596_v25 }
 0x104   :  { %v489_v45 = vpop.eup %488  ;;  %353 = vst [vmem:[%s744_s3 + $0x58] sm:$0xff] %v337_v19  ;;  %v327_v46 = vsel %vm229_vm1, %v487_v44, %v601_v30 }
 0x105   :  { %v491_v24 = vpop.eup %490  ;;  %343 = vst [vmem:[%s744_s3 + $0x8] sm:$0xff] %v327_v46  ;;  %v335_v47 = vsel %vm229_vm1, %v489_v45, %v604_v31 }
 0x106   :  { %v493_v49 = vpop.eup %492  ;;  %351 = vst [vmem:[%s744_s3 + $0x48] sm:$0xff] %v335_v47  ;;  %v332_v25 = vsel %vm229_vm1, %v491_v24, %v611_v38 }
 0x107   :  { %v495_v50 = vpop.eup %494  ;;  %348 = vst [vmem:[%s744_s3 + $0x30] sm:$0xff] %v332_v25  ;;  %v340_v30 = vsel %vm229_vm1, %v493_v49, %v614_v39 }
 0x108   :  { %v497_v51 = vpop.eup %496  ;;  %356 = vst [vmem:[%s744_s3 + $0x70] sm:$0xff] %v340_v30  ;;  %v330_v31 = vsel %vm229_vm1, %v495_v50, %v617_v42 }
 0x109   :  { %v499_v52 = vpop.eup %498  ;;  %346 = vst [vmem:[%s744_s3 + $0x20] sm:$0xff] %v330_v31  ;;  %v338_v38 = vsel %vm229_vm1, %v497_v51, %v620_v43 }
 0x10a   :  { %v501_v53 = vpop.eup %500  ;;  %354 = vst [vmem:[%s744_s3 + $0x60] sm:$0xff] %v338_v38  ;;  %v333_v39 = vsel %vm229_vm1, %v499_v52, %v625_v48 }
 0x10b   :  { %v503_v54 = vpop.eup %502  ;;  %349 = vst [vmem:[%s744_s3 + $0x38] sm:$0xff] %v333_v39  ;;  %v293_v42 = vadd.f32 1.0, %v501_v53 }
 0x10c   :  { %v505_v55 = vpop.eup %504  ;;  %v283_v56 = vadd.f32 1.0, %v503_v54 }
 0x10d   :  { %506 = vrcp.f32 %v293_v42  ;;  %v291_v57 = vadd.f32 1.0, %v505_v55 }
 0x10e   :  { %508 = vrcp.f32 %v283_v56 }
 0x10f   :  { %510 = vrcp.f32 %v291_v57 }
 0x117   :  { %v507_v43 = vpop.eup %506 }
 0x118   :  { %v509_v58 = vpop.eup %508  ;;  %v341_v59 = vsel %vm229_vm1, %v507_v43, %v633_v9 }
 0x119   :  { %v511_v60 = vpop.eup %510  ;;  %357 = vst [vmem:[%s744_s3 + $0x78] sm:$0xff] %v341_v59  ;;  %v331_v48 = vsel %vm229_vm1, %v509_v58, %v636_v13 }
 0x11a   :  { %347 = vst [vmem:[%s744_s3 + $0x28] sm:$0xff] %v331_v48  ;;  %v339_v61 = vsel %vm229_vm1, %v511_v60, %v639_v20 }
 0x11b   :  { %355 = vst [vmem:[%s744_s3 + $0x68] sm:$0xff] %v339_v61 }

// kernel: efficientnet_convt_forward.11
= control target key start
LH: loop header
LB: loop body
LE: loop exit
PB: predicated region body
PF: predicated region fallthrough
CT: control target
= control target key end

     0   :  { %vm118_vm0 = vcmask 1044480   ;;  %vm119_vm1 = vcmask 1045504   ;;  %vm93_vm2 = vcmask 220160   ;;  %v322_v1 = vmov 65535   ;;  %s432_s1 = inlined_call_operand.vmem [shape: bf16[27,128], index: 1, kind: input, shape index: {}]   ;;  %s433_s0 = inlined_call_operand.vmem [shape: bf16[128,27], index: 0, kind: input, shape index: {}]   ;;  %s434_s2 = inlined_call_operand.vmem [shape: f32[1,128], index: 2, kind: input, shape index: {}]   ;;  %s435_s3 = inlined_call_operand.vmem [shape: f32[128,128], index: 3, kind: output, shape index: {}]  }
   0x1   :  { %v312_v0 = vld [vmem:[%s432_s1] sm:$0xff]   ;;  %v120_v2 = vsel %vm118_vm0, 4294967295, %v322_v1  ;;  %v313_v3 = vld [vmem:[%s432_s1 + $0x8] sm:$0x3f]   ;;  %v318_v10 = vld [vmem:[%s433_s0 + $0x10] sm:$0xff]  }
   0x2   :  { %287 = vmatprep.subr.bf16.mxu0 %v312_v0  ;;  %307 = vmatprep.subr.bf16.mxu1 %v312_v0  ;;  %v121_v4 = vsel %vm119_vm1, %v120_v2, 0  ;;  %v314_v5 = vld [vmem:[%s433_s0] sm:$0xff]   ;;  %v316_v8 = vld [vmem:[%s433_s0 + $0x8] sm:$0xff]   ;;  %v319_v11 = vld [vmem:[%s433_s0 + $0x30] sm:$0xff]  }
   0x3   :  { %288 = vmatpush3.bf16.msra.mxu0 %v312_v0  ;;  %309 = vmatpush3.bf16.msra.mxu1 %v312_v0  ;;  %v123_v6 = vand.u32 %v313_v3, %v121_v4  ;;  %v315_v7 = vld [vmem:[%s433_s0 + $0x20] sm:$0xff]   ;;  %v317_v9 = vld [vmem:[%s433_s0 + $0x28] sm:$0xff]   ;;  %v320_v12 = vld [vmem:[%s433_s0 + $0x18] sm:$0xff]  }
   0x4   :  { %291 = vmatprep.mubr.msk.bf16.mxu0 %vm93_vm2, %v314_v5  ;;  %299 = vmatprep.mubr.msk.bf16.mxu1 %vm93_vm2, %v315_v7  ;;  %v321_v13 = vld [vmem:[%s433_s0 + $0x38] sm:$0xff]   ;;  %v258_v14 = vld [vmem:[%s434_s2] ss:$0 sm:$0xff] }
   0x5   :  { %289 = vmatprep.subr.bf16.mxu0 %v123_v6  ;;  %308 = vmatprep.subr.bf16.mxu1 %v123_v6 }
   0x7   :  { %290 = vmatpush3.bf16.msra.mxu0 %v123_v6  ;;  %310 = vmatpush3.bf16.msra.mxu1 %v123_v6 }
   0xa   :  { %292 = vmatmul.mubr.msk.bf16.vlgmr.msra.gmra.mrb[0].mxu0 %vm93_vm2, %v316_v8  ;;  %300 = vmatmul.mubr.msk.bf16.vlgmr.msra.gmra.mrb[0].mxu1 %vm93_vm2, %v317_v9 }
   0xb   :  { %295 = vmatprep.mubr.msk.bf16.mxu0 %vm93_vm2, %v318_v10  ;;  %303 = vmatprep.mubr.msk.bf16.mxu1 %vm93_vm2, %v319_v11 }
  0x12   :  { %296 = vmatmul.mubr.msk.bf16.gmra.mrb[4].mxu0 %vm93_vm2, %v320_v12  ;;  %304 = vmatmul.mubr.msk.bf16.gmra.mrb[4].mxu1 %vm93_vm2, %v321_v13 }
  0xdd   :  { %v293_v15 = vpop.f32.mrb[0].mxu0  ;;  %v301_v16 = vpop.f32.mrb[0].mxu1 }
  0xde   :  { %v168_v17 = vadd.f32 %v293_v15, %v258_v14  ;;  %v200_v18 = vadd.f32 %v301_v16, %v258_v14  ;;  %v159_v19 = vpop.f32.mrb[1].mxu0  ;;  %v191_v20 = vpop.f32.mrb[1].mxu1 }
  0xdf   :  { %v160_v21 = vadd.f32 %v258_v14, %v159_v19  ;;  %v192_v22 = vadd.f32 %v258_v14, %v191_v20  ;;  %v294_v23 = vpop.f32.mrb[2].mxu0  ;;  %v302_v24 = vpop.f32.mrb[2].mxu1 }
  0xe0   :  { %v224_v25 = vmax.f32 %v168_v17, 0.0  ;;  %v232_v26 = vmax.f32 %v200_v18, 0.0  ;;  %v171_v27 = vadd.f32 %v294_v23, %v258_v14  ;;  %v203_v28 = vadd.f32 %v302_v24, %v258_v14  ;;  %v162_v29 = vpop.f32.mrb[3].mxu0  ;;  %v194_v30 = vpop.f32.mrb[3].mxu1 }
  0xe1   :  { %v222_v31 = vmax.f32 %v160_v21, 0.0  ;;  %v230_v32 = vmax.f32 %v192_v22, 0.0  ;;  %v163_v33 = vadd.f32 %v258_v14, %v162_v29  ;;  %v195_v34 = vadd.f32 %v258_v14, %v194_v30 }
  0xe2   :  { %240 = vst [vmem:[%s435_s3 + $0x10] sm:$0xff] %v224_v25  ;;  %248 = vst [vmem:[%s435_s3 + $0x50] sm:$0xff] %v232_v26  ;;  %v225_v35 = vmax.f32 %v171_v27, 0.0  ;;  %v233_v36 = vmax.f32 %v203_v28, 0.0 }
  0xe3   :  { %238 = vst [vmem:[%s435_s3] sm:$0xff] %v222_v31  ;;  %246 = vst [vmem:[%s435_s3 + $0x40] sm:$0xff] %v230_v32  ;;  %v223_v37 = vmax.f32 %v163_v33, 0.0  ;;  %v231_v38 = vmax.f32 %v195_v34, 0.0 }
  0xe4   :  { %241 = vst [vmem:[%s435_s3 + $0x18] sm:$0xff] %v225_v35  ;;  %249 = vst [vmem:[%s435_s3 + $0x58] sm:$0xff] %v233_v36 }
  0xe5   :  { %239 = vst [vmem:[%s435_s3 + $0x8] sm:$0xff] %v223_v37  ;;  %247 = vst [vmem:[%s435_s3 + $0x48] sm:$0xff] %v231_v38  ;;  %v297_v39 = vpop.f32.mrb[4].mxu0  ;;  %v305_v40 = vpop.f32.mrb[4].mxu1 }
  0xe6   :  { %v184_v41 = vadd.f32 %v297_v39, %v258_v14  ;;  %v216_v42 = vadd.f32 %v305_v40, %v258_v14  ;;  %v175_v43 = vpop.f32.mrb[5].mxu0  ;;  %v207_v44 = vpop.f32.mrb[5].mxu1 }
  0xe7   :  { %v176_v45 = vadd.f32 %v258_v14, %v175_v43  ;;  %v208_v46 = vadd.f32 %v258_v14, %v207_v44  ;;  %v298_v47 = vpop.f32.mrb[6].mxu0  ;;  %v306_v48 = vpop.f32.mrb[6].mxu1 }
  0xe8   :  { %v228_v49 = vmax.f32 %v184_v41, 0.0  ;;  %v236_v50 = vmax.f32 %v216_v42, 0.0  ;;  %v187_v51 = vadd.f32 %v298_v47, %v258_v14  ;;  %v219_v52 = vadd.f32 %v306_v48, %v258_v14  ;;  %v178_v53 = vpop.f32.mrb[7].mxu0  ;;  %v210_v54 = vpop.f32.mrb[7].mxu1 }
  0xe9   :  { %v226_v55 = vmax.f32 %v176_v45, 0.0  ;;  %v234_v56 = vmax.f32 %v208_v46, 0.0  ;;  %v179_v57 = vadd.f32 %v258_v14, %v178_v53  ;;  %v211_v58 = vadd.f32 %v258_v14, %v210_v54 }
  0xea   :  { %244 = vst [vmem:[%s435_s3 + $0x30] sm:$0xff] %v228_v49  ;;  %252 = vst [vmem:[%s435_s3 + $0x70] sm:$0xff] %v236_v50  ;;  %v229_v59 = vmax.f32 %v187_v51, 0.0  ;;  %v237_v60 = vmax.f32 %v219_v52, 0.0 }
  0xeb   :  { %242 = vst [vmem:[%s435_s3 + $0x20] sm:$0xff] %v226_v55  ;;  %250 = vst [vmem:[%s435_s3 + $0x60] sm:$0xff] %v234_v56  ;;  %v227_v61 = vmax.f32 %v179_v57, 0.0  ;;  %v235_v62 = vmax.f32 %v211_v58, 0.0 }
  0xec   :  { %245 = vst [vmem:[%s435_s3 + $0x38] sm:$0xff] %v229_v59  ;;  %253 = vst [vmem:[%s435_s3 + $0x78] sm:$0xff] %v237_v60 }
  0xed   :  { %243 = vst [vmem:[%s435_s3 + $0x28] sm:$0xff] %v227_v61  ;;  %251 = vst [vmem:[%s435_s3 + $0x68] sm:$0xff] %v235_v62 }

</bundles_post_ra>
